<compile_context>
chip_gen: v7x
topology: tpu7x:2x2x1
jax: 0.10.0
libtpu: 0.0.40
codegen_flags: <defaults>
</compile_context>

<pallas_src>
import math

import numpy as np
import jax
import jax.numpy as jnp
from jax.experimental import pallas as pl
from jax.experimental.pallas import tpu as pltpu


def log2_diff(a, b):
    return int(round(math.log2(a) - math.log2(b)))


# -----------------------------------------------------------------------------
# mish, single-exp form (in-kernel, f32):
#   mish(x) = x * tanh(softplus(x)) = x * u / (u + 2),  u = t*(t+2), t = exp(x)
# Only the exp argument is clamped; for x > 20 the ratio is exactly 1.0 in f32.
# -----------------------------------------------------------------------------
def _mish_kernel(x):
    t = jnp.exp(jnp.minimum(x, 20.0))
    u = t * (t + 2.0)
    return x * u * pl.reciprocal(u + 2.0, approx=True)


# -----------------------------------------------------------------------------
# Wrapper-side (XLA) im2col for the FIRST layer only: 3x3 / stride-2 / pad-1.
# Produces (B, Ho*Wo, 9*C) patches, column order (kh*3+kw)*C + ci, matching
# w.reshape(9*C, C_out).
# -----------------------------------------------------------------------------
def _im2col_stride2(x):
    B, H, W, C = x.shape
    Ho, Wo = H // 2, W // 2
    xp = jnp.pad(x, ((0, 0), (1, 1), (1, 1), (0, 0)))
    taps = [xp[:, kh:kh + 2 * Ho:2, kw:kw + 2 * Wo:2, :]
            for kh in range(3) for kw in range(3)]
    p = jnp.concatenate(taps, axis=-1)            # (B, Ho, Wo, 9*C)
    return p.reshape(B, Ho * Wo, 9 * C)


# -----------------------------------------------------------------------------
# Constant 0/1 gather matrices for layers >= 1: T[k, m, n] = 1 iff tap k of
# output pixel m (row-major) reads input pixel n; rows hitting the zero-pad
# border are all-zero.  (T_k @ Y) reproduces the padded/strided tap exactly.
# -----------------------------------------------------------------------------
def _build_gather_taps(H, W):
    Ho, Wo = H // 2, W // 2
    T = np.zeros((9, Ho * Wo, H * W), np.float32)
    for kh in range(3):
        for kw in range(3):
            k = kh * 3 + kw
            for i in range(Ho):
                for j in range(Wo):
                    r, c = 2 * i + kh - 1, 2 * j + kw - 1
                    if 0 <= r < H and 0 <= c < W:
                        T[k, i * Wo + j, r * W + c] = 1.0
    return T


# -----------------------------------------------------------------------------
# Fused kernel: all conv layers + FC for one batch element.
# refs = [p0, w_0..w_{L-1}, b_0..b_{L-1}, T_1..T_{L-1}, fc_w, fc_b, out]
# -----------------------------------------------------------------------------
def _make_fused_kernel(num_layers):
    L = num_layers

    def kernel(*refs):
        p0_ref = refs[0]
        w_refs = refs[1:1 + L]
        b_refs = refs[1 + L:1 + 2 * L]
        t_refs = refs[1 + 2 * L:3 * L]          # L-1 gather tensors
        fcw_ref = refs[3 * L]
        fcb_ref = refs[3 * L + 1]
        o_ref = refs[3 * L + 2]

        y = p0_ref[0]                           # (M0, 9*C0) bf16 layer-0 patches
        for l in range(L):
            if l == 0:
                p = y
            else:
                t_ref = t_refs[l - 1]           # (9, M_l, N_l) bf16 0/1 gather
                taps = [
                    jnp.dot(t_ref[k], y,
                            preferred_element_type=jnp.float32).astype(jnp.bfloat16)
                    for k in range(9)
                ]
                p = jnp.concatenate(taps, axis=1)          # (M_l, 9*C_l) bf16
            acc = jnp.dot(p, w_refs[l][...],
                          preferred_element_type=jnp.float32)   # (M_l, C_out) f32
            acc = acc + b_refs[l][...]                           # + (1, C_out)
            y = _mish_kernel(acc).astype(jnp.bfloat16)
        # after the last conv layer spatial is 1x1: y is (1, z) bf16
        out = (jnp.dot(y, fcw_ref[...], preferred_element_type=jnp.float32)
               + fcb_ref[...])                                   # (1, z) f32
        o_ref[0] = out.astype(o_ref.dtype)

    return kernel


def _const_index_map(ndim):
    return lambda *args: (0,) * ndim


# -----------------------------------------------------------------------------
# Module: parameter init + forward
# -----------------------------------------------------------------------------
def init_params(key, imsize, nc_in, z_dims):
    n_down = log2_diff(imsize, 1)
    convs = []
    nc = nc_in
    for _ in range(n_down):
        next_nc = min(z_dims, nc * 2)
        key, kw_, kb_ = jax.random.split(key, 3)
        fan_in = nc * 9
        w = jax.random.normal(kw_, (3, 3, nc, next_nc), jnp.float32) / math.sqrt(fan_in)
        b = jax.random.normal(kb_, (next_nc,), jnp.float32) * 0.01
        convs.append((w, b))
        nc = next_nc
    key, kfc = jax.random.split(key)
    # StyleGAN2 equalized FC, gain folded at init: fc_w = randn(out,in).T / sqrt(in)
    fc_w = jax.random.normal(kfc, (z_dims, z_dims), jnp.float32).T / math.sqrt(z_dims)
    fc_b = jnp.zeros((z_dims,), jnp.float32)
    # constant gather matrices for conv layers 1..n_down-1 (layer 0 uses glue im2col)
    gathers = []
    h = imsize // 2
    for _ in range(1, n_down):
        gathers.append(jnp.asarray(_build_gather_taps(h, h), jnp.bfloat16))
        h //= 2
    return {"convs": convs, "fc_w": fc_w, "fc_b": fc_b, "gathers": gathers}


def feat_map_to_latent(params, x_nchw):
    convs = params["convs"]
    gathers = list(params["gathers"])
    fc_w = params["fc_w"]
    fc_b = params["fc_b"]
    z = fc_w.shape[1]
    L = len(convs)

    # glue (runs once, on the small HBM input only): NCHW -> NHWC + layer-0 im2col
    x = jnp.transpose(x_nchw, (0, 2, 3, 1))
    B = x.shape[0]
    p0 = _im2col_stride2(x).astype(jnp.bfloat16)               # (B, M0, 9*C0)

    # kernel-ready (bf16 MXU operands, f32 biases)
    conv_ws = [w.reshape(9 * w.shape[2], w.shape[3]).astype(jnp.bfloat16)
               for (w, _) in convs]
    conv_bs = [b.reshape(1, b.shape[0]) for (_, b) in convs]
    fc_w_k = fc_w.astype(jnp.bfloat16)
    fc_b_k = fc_b.reshape(1, z)

    inputs = [p0] + conv_ws + conv_bs + gathers + [fc_w_k, fc_b_k]
    in_specs = [pl.BlockSpec((1,) + p0.shape[1:], lambda bi: (bi, 0, 0))]
    for a in conv_ws + conv_bs + gathers + [fc_w_k, fc_b_k]:
        in_specs.append(pl.BlockSpec(a.shape, _const_index_map(a.ndim)))

    out = pl.pallas_call(
        _make_fused_kernel(L),
        out_shape=jax.ShapeDtypeStruct((B, 1, z), jnp.float32),
        grid_spec=pltpu.PrefetchScalarGridSpec(
            num_scalar_prefetch=0,
            grid=(B,),
            in_specs=in_specs,
            out_specs=pl.BlockSpec((1, 1, z), lambda bi: (bi, 0, 0)),
        ),
        compiler_params=pltpu.CompilerParams(
            dimension_semantics=("parallel",)),
    )(*inputs)
    return out.reshape(B, z)


# -----------------------------------------------------------------------------
# Pure-JAX reference (f32) for validation
# -----------------------------------------------------------------------------
def reference_forward(params, x_nchw):
    def mish(v):
        return v * jnp.tanh(jnp.logaddexp(v, 0.0))

    x = x_nchw
    for (w, b) in params["convs"]:
        x = jax.lax.conv_general_dilated(
            x, w, window_strides=(2, 2), padding=((1, 1), (1, 1)),
            dimension_numbers=("NCHW", "HWIO", "NCHW"))
        x = mish(x + b.reshape(1, -1, 1, 1))
    x = x.reshape(x.shape[0], -1)
    return x @ params["fc_w"] + params["fc_b"]


if __name__ == "__main__":
    imsize, nc_in, z_dims, B = 16, 4, 32, 2
    key = jax.random.PRNGKey(0)
    kx, kp = jax.random.split(key)
    x = jax.random.normal(kx, (B, nc_in, imsize, imsize), jnp.float32)
    params = init_params(kp, imsize, nc_in, z_dims)

    fwd = jax.jit(feat_map_to_latent)
    out = jax.block_until_ready(fwd(params, x))
    assert out.shape == (B, z_dims), out.shape
    assert bool(jnp.all(jnp.isfinite(out)))

    ref = jax.block_until_ready(jax.jit(reference_forward)(params, x))
    err = float(jnp.max(jnp.abs(out - ref)))
    tol = 5e-2 + 5e-2 * float(jnp.max(jnp.abs(ref)))
    assert err <= tol, (err, tol)

    print("KERNEL_OK")
</pallas_src>

<mosaic_0001>
module attributes {stable_mosaic.version = 11 : i64} {
  func.func @kernel(%arg0: i32, %arg1: memref<1x64x36xbf16, #tpu.memory_space<vmem>>, %arg2: memref<36x8xbf16, #tpu.memory_space<vmem>>, %arg3: memref<72x16xbf16, #tpu.memory_space<vmem>>, %arg4: memref<144x32xbf16, #tpu.memory_space<vmem>>, %arg5: memref<288x32xbf16, #tpu.memory_space<vmem>>, %arg6: memref<1x8xf32, #tpu.memory_space<vmem>>, %arg7: memref<1x16xf32, #tpu.memory_space<vmem>>, %arg8: memref<1x32xf32, #tpu.memory_space<vmem>>, %arg9: memref<1x32xf32, #tpu.memory_space<vmem>>, %arg10: memref<9x16x64xbf16, #tpu.memory_space<vmem>>, %arg11: memref<9x4x16xbf16, #tpu.memory_space<vmem>>, %arg12: memref<9x1x4xbf16, #tpu.memory_space<vmem>>, %arg13: memref<32x32xbf16, #tpu.memory_space<vmem>>, %arg14: memref<1x32xf32, #tpu.memory_space<vmem>>, %arg15: memref<1x1x32xf32, #tpu.memory_space<vmem>>) attributes {dimension_semantics = [#tpu.dimension_semantics<parallel>], iteration_bounds = array<i64: 2>, scalar_prefetch = 0 : i64, scratch_operands = 0 : i64, tpu.core_type = #tpu.core_type<tc>, window_params = [{transform_indices = @transform_0, window_bounds = array<i64: 1, 64, 36>}, {pipeline_mode = #tpu.pipeline_mode<synchronous>, transform_indices = @transform_1, window_bounds = array<i64: 36, 8>}, {pipeline_mode = #tpu.pipeline_mode<synchronous>, transform_indices = @transform_2, window_bounds = array<i64: 72, 16>}, {pipeline_mode = #tpu.pipeline_mode<synchronous>, transform_indices = @transform_3, window_bounds = array<i64: 144, 32>}, {pipeline_mode = #tpu.pipeline_mode<synchronous>, transform_indices = @transform_4, window_bounds = array<i64: 288, 32>}, {pipeline_mode = #tpu.pipeline_mode<synchronous>, transform_indices = @transform_5, window_bounds = array<i64: 1, 8>}, {pipeline_mode = #tpu.pipeline_mode<synchronous>, transform_indices = @transform_6, window_bounds = array<i64: 1, 16>}, {pipeline_mode = #tpu.pipeline_mode<synchronous>, transform_indices = @transform_7, window_bounds = array<i64: 1, 32>}, {pipeline_mode = #tpu.pipeline_mode<synchronous>, transform_indices = @transform_8, window_bounds = array<i64: 1, 32>}, {pipeline_mode = #tpu.pipeline_mode<synchronous>, transform_indices = @transform_9, window_bounds = array<i64: 9, 16, 64>}, {pipeline_mode = #tpu.pipeline_mode<synchronous>, transform_indices = @transform_10, window_bounds = array<i64: 9, 4, 16>}, {pipeline_mode = #tpu.pipeline_mode<synchronous>, transform_indices = @transform_11, window_bounds = array<i64: 9, 1, 4>}, {pipeline_mode = #tpu.pipeline_mode<synchronous>, transform_indices = @transform_12, window_bounds = array<i64: 32, 32>}, {pipeline_mode = #tpu.pipeline_mode<synchronous>, transform_indices = @transform_13, window_bounds = array<i64: 1, 32>}, {transform_indices = @transform_14, window_bounds = array<i64: 1, 1, 32>}]} {
    %c0 = arith.constant 0 : index
    %c0_0 = arith.constant 0 : index
    %c0_1 = arith.constant 0 : index
    %0 = vector.load %arg1[%c0, %c0_0, %c0_1] : memref<1x64x36xbf16, #tpu.memory_space<vmem>>, vector<1x64x36xbf16>
    %1 = vector.shape_cast %0 : vector<1x64x36xbf16> to vector<64x36xbf16>
    %c0_2 = arith.constant 0 : index
    %c0_3 = arith.constant 0 : index
    %2 = vector.load %arg2[%c0_2, %c0_3] : memref<36x8xbf16, #tpu.memory_space<vmem>>, vector<36x8xbf16>
    %cst = arith.constant dense<0.000000e+00> : vector<64x8xf32>
    %3 = tpu.matmul %1, %2, %cst {dimension_numbers = #tpu.dot_dimension_numbers<[1], [0], [0], [1], [0, 0, 1, 1], [], []>} : vector<64x36xbf16>, vector<36x8xbf16>, vector<64x8xf32> -> vector<64x8xf32>
    %c0_4 = arith.constant 0 : index
    %c0_5 = arith.constant 0 : index
    %4 = vector.load %arg6[%c0_4, %c0_5] : memref<1x8xf32, #tpu.memory_space<vmem>>, vector<1x8xf32>
    %5 = vector.broadcast %4 : vector<1x8xf32> to vector<64x8xf32>
    %6 = arith.addf %3, %5 : vector<64x8xf32>
    %cst_6 = arith.constant 2.000000e+01 : f32
    %7 = vector.broadcast %cst_6 : f32 to vector<64x8xf32>
    %8 = arith.minimumf %6, %7 : vector<64x8xf32>
    %9 = math.exp %8 : vector<64x8xf32>
    %cst_7 = arith.constant 2.000000e+00 : f32
    %10 = vector.broadcast %cst_7 : f32 to vector<64x8xf32>
    %11 = arith.addf %9, %10 : vector<64x8xf32>
    %12 = arith.mulf %9, %11 : vector<64x8xf32>
    %13 = arith.mulf %6, %12 : vector<64x8xf32>
    %cst_8 = arith.constant 2.000000e+00 : f32
    %14 = vector.broadcast %cst_8 : f32 to vector<64x8xf32>
    %15 = arith.addf %12, %14 : vector<64x8xf32>
    %16 = tpu.reciprocal %15 {approx = true} : vector<64x8xf32> -> vector<64x8xf32>
    %17 = arith.mulf %13, %16 : vector<64x8xf32>
    %18 = arith.truncf %17 : vector<64x8xf32> to vector<64x8xbf16>
    %c0_9 = arith.constant 0 : index
    %c0_10 = arith.constant 0 : index
    %c0_11 = arith.constant 0 : index
    %19 = vector.load %arg10[%c0_9, %c0_10, %c0_11] : memref<9x16x64xbf16, #tpu.memory_space<vmem>>, vector<1x16x64xbf16>
    %20 = vector.shape_cast %19 : vector<1x16x64xbf16> to vector<16x64xbf16>
    %cst_12 = arith.constant dense<0.000000e+00> : vector<16x8xf32>
    %21 = tpu.matmul %20, %18, %cst_12 {dimension_numbers = #tpu.dot_dimension_numbers<[1], [0], [0], [1], [0, 0, 1, 1], [], []>} : vector<16x64xbf16>, vector<64x8xbf16>, vector<16x8xf32> -> vector<16x8xf32>
    %22 = arith.truncf %21 : vector<16x8xf32> to vector<16x8xbf16>
    %c1 = arith.constant 1 : index
    %c0_13 = arith.constant 0 : index
    %c0_14 = arith.constant 0 : index
    %23 = vector.load %arg10[%c1, %c0_13, %c0_14] : memref<9x16x64xbf16, #tpu.memory_space<vmem>>, vector<1x16x64xbf16>
    %24 = vector.shape_cast %23 : vector<1x16x64xbf16> to vector<16x64xbf16>
    %cst_15 = arith.constant dense<0.000000e+00> : vector<16x8xf32>
    %25 = tpu.matmul %24, %18, %cst_15 {dimension_numbers = #tpu.dot_dimension_numbers<[1], [0], [0], [1], [0, 0, 1, 1], [], []>} : vector<16x64xbf16>, vector<64x8xbf16>, vector<16x8xf32> -> vector<16x8xf32>
    %26 = arith.truncf %25 : vector<16x8xf32> to vector<16x8xbf16>
    %c2 = arith.constant 2 : index
    %c0_16 = arith.constant 0 : index
    %c0_17 = arith.constant 0 : index
    %27 = vector.load %arg10[%c2, %c0_16, %c0_17] : memref<9x16x64xbf16, #tpu.memory_space<vmem>>, vector<1x16x64xbf16>
    %28 = vector.shape_cast %27 : vector<1x16x64xbf16> to vector<16x64xbf16>
    %cst_18 = arith.constant dense<0.000000e+00> : vector<16x8xf32>
    %29 = tpu.matmul %28, %18, %cst_18 {dimension_numbers = #tpu.dot_dimension_numbers<[1], [0], [0], [1], [0, 0, 1, 1], [], []>} : vector<16x64xbf16>, vector<64x8xbf16>, vector<16x8xf32> -> vector<16x8xf32>
    %30 = arith.truncf %29 : vector<16x8xf32> to vector<16x8xbf16>
    %c3 = arith.constant 3 : index
    %c0_19 = arith.constant 0 : index
    %c0_20 = arith.constant 0 : index
    %31 = vector.load %arg10[%c3, %c0_19, %c0_20] : memref<9x16x64xbf16, #tpu.memory_space<vmem>>, vector<1x16x64xbf16>
    %32 = vector.shape_cast %31 : vector<1x16x64xbf16> to vector<16x64xbf16>
    %cst_21 = arith.constant dense<0.000000e+00> : vector<16x8xf32>
    %33 = tpu.matmul %32, %18, %cst_21 {dimension_numbers = #tpu.dot_dimension_numbers<[1], [0], [0], [1], [0, 0, 1, 1], [], []>} : vector<16x64xbf16>, vector<64x8xbf16>, vector<16x8xf32> -> vector<16x8xf32>
    %34 = arith.truncf %33 : vector<16x8xf32> to vector<16x8xbf16>
    %c4 = arith.constant 4 : index
    %c0_22 = arith.constant 0 : index
    %c0_23 = arith.constant 0 : index
    %35 = vector.load %arg10[%c4, %c0_22, %c0_23] : memref<9x16x64xbf16, #tpu.memory_space<vmem>>, vector<1x16x64xbf16>
    %36 = vector.shape_cast %35 : vector<1x16x64xbf16> to vector<16x64xbf16>
    %cst_24 = arith.constant dense<0.000000e+00> : vector<16x8xf32>
    %37 = tpu.matmul %36, %18, %cst_24 {dimension_numbers = #tpu.dot_dimension_numbers<[1], [0], [0], [1], [0, 0, 1, 1], [], []>} : vector<16x64xbf16>, vector<64x8xbf16>, vector<16x8xf32> -> vector<16x8xf32>
    %38 = arith.truncf %37 : vector<16x8xf32> to vector<16x8xbf16>
    %c5 = arith.constant 5 : index
    %c0_25 = arith.constant 0 : index
    %c0_26 = arith.constant 0 : index
    %39 = vector.load %arg10[%c5, %c0_25, %c0_26] : memref<9x16x64xbf16, #tpu.memory_space<vmem>>, vector<1x16x64xbf16>
    %40 = vector.shape_cast %39 : vector<1x16x64xbf16> to vector<16x64xbf16>
    %cst_27 = arith.constant dense<0.000000e+00> : vector<16x8xf32>
    %41 = tpu.matmul %40, %18, %cst_27 {dimension_numbers = #tpu.dot_dimension_numbers<[1], [0], [0], [1], [0, 0, 1, 1], [], []>} : vector<16x64xbf16>, vector<64x8xbf16>, vector<16x8xf32> -> vector<16x8xf32>
    %42 = arith.truncf %41 : vector<16x8xf32> to vector<16x8xbf16>
    %c6 = arith.constant 6 : index
    %c0_28 = arith.constant 0 : index
    %c0_29 = arith.constant 0 : index
    %43 = vector.load %arg10[%c6, %c0_28, %c0_29] : memref<9x16x64xbf16, #tpu.memory_space<vmem>>, vector<1x16x64xbf16>
    %44 = vector.shape_cast %43 : vector<1x16x64xbf16> to vector<16x64xbf16>
    %cst_30 = arith.constant dense<0.000000e+00> : vector<16x8xf32>
    %45 = tpu.matmul %44, %18, %cst_30 {dimension_numbers = #tpu.dot_dimension_numbers<[1], [0], [0], [1], [0, 0, 1, 1], [], []>} : vector<16x64xbf16>, vector<64x8xbf16>, vector<16x8xf32> -> vector<16x8xf32>
    %46 = arith.truncf %45 : vector<16x8xf32> to vector<16x8xbf16>
    %c7 = arith.constant 7 : index
    %c0_31 = arith.constant 0 : index
    %c0_32 = arith.constant 0 : index
    %47 = vector.load %arg10[%c7, %c0_31, %c0_32] : memref<9x16x64xbf16, #tpu.memory_space<vmem>>, vector<1x16x64xbf16>
    %48 = vector.shape_cast %47 : vector<1x16x64xbf16> to vector<16x64xbf16>
    %cst_33 = arith.constant dense<0.000000e+00> : vector<16x8xf32>
    %49 = tpu.matmul %48, %18, %cst_33 {dimension_numbers = #tpu.dot_dimension_numbers<[1], [0], [0], [1], [0, 0, 1, 1], [], []>} : vector<16x64xbf16>, vector<64x8xbf16>, vector<16x8xf32> -> vector<16x8xf32>
    %50 = arith.truncf %49 : vector<16x8xf32> to vector<16x8xbf16>
    %c8 = arith.constant 8 : index
    %c0_34 = arith.constant 0 : index
    %c0_35 = arith.constant 0 : index
    %51 = vector.load %arg10[%c8, %c0_34, %c0_35] : memref<9x16x64xbf16, #tpu.memory_space<vmem>>, vector<1x16x64xbf16>
    %52 = vector.shape_cast %51 : vector<1x16x64xbf16> to vector<16x64xbf16>
    %cst_36 = arith.constant dense<0.000000e+00> : vector<16x8xf32>
    %53 = tpu.matmul %52, %18, %cst_36 {dimension_numbers = #tpu.dot_dimension_numbers<[1], [0], [0], [1], [0, 0, 1, 1], [], []>} : vector<16x64xbf16>, vector<64x8xbf16>, vector<16x8xf32> -> vector<16x8xf32>
    %54 = arith.truncf %53 : vector<16x8xf32> to vector<16x8xbf16>
    %55 = tpu.concatenate %22, %26, %30, %34, %38, %42, %46, %50, %54 in 1 : vector<16x8xbf16>, vector<16x8xbf16>, vector<16x8xbf16>, vector<16x8xbf16>, vector<16x8xbf16>, vector<16x8xbf16>, vector<16x8xbf16>, vector<16x8xbf16>, vector<16x8xbf16> -> vector<16x72xbf16>
    %c0_37 = arith.constant 0 : index
    %c0_38 = arith.constant 0 : index
    %56 = vector.load %arg3[%c0_37, %c0_38] : memref<72x16xbf16, #tpu.memory_space<vmem>>, vector<72x16xbf16>
    %cst_39 = arith.constant dense<0.000000e+00> : vector<16x16xf32>
    %57 = tpu.matmul %55, %56, %cst_39 {dimension_numbers = #tpu.dot_dimension_numbers<[1], [0], [0], [1], [0, 0, 1, 1], [], []>} : vector<16x72xbf16>, vector<72x16xbf16>, vector<16x16xf32> -> vector<16x16xf32>
    %c0_40 = arith.constant 0 : index
    %c0_41 = arith.constant 0 : index
    %58 = vector.load %arg7[%c0_40, %c0_41] : memref<1x16xf32, #tpu.memory_space<vmem>>, vector<1x16xf32>
    %59 = vector.broadcast %58 : vector<1x16xf32> to vector<16x16xf32>
    %60 = arith.addf %57, %59 : vector<16x16xf32>
    %cst_42 = arith.constant 2.000000e+01 : f32
    %61 = vector.broadcast %cst_42 : f32 to vector<16x16xf32>
    %62 = arith.minimumf %60, %61 : vector<16x16xf32>
    %63 = math.exp %62 : vector<16x16xf32>
    %cst_43 = arith.constant 2.000000e+00 : f32
    %64 = vector.broadcast %cst_43 : f32 to vector<16x16xf32>
    %65 = arith.addf %63, %64 : vector<16x16xf32>
    %66 = arith.mulf %63, %65 : vector<16x16xf32>
    %67 = arith.mulf %60, %66 : vector<16x16xf32>
    %cst_44 = arith.constant 2.000000e+00 : f32
    %68 = vector.broadcast %cst_44 : f32 to vector<16x16xf32>
    %69 = arith.addf %66, %68 : vector<16x16xf32>
    %70 = tpu.reciprocal %69 {approx = true} : vector<16x16xf32> -> vector<16x16xf32>
    %71 = arith.mulf %67, %70 : vector<16x16xf32>
    %72 = arith.truncf %71 : vector<16x16xf32> to vector<16x16xbf16>
    %c0_45 = arith.constant 0 : index
    %c0_46 = arith.constant 0 : index
    %c0_47 = arith.constant 0 : index
    %73 = vector.load %arg11[%c0_45, %c0_46, %c0_47] : memref<9x4x16xbf16, #tpu.memory_space<vmem>>, vector<1x4x16xbf16>
    %74 = vector.shape_cast %73 : vector<1x4x16xbf16> to vector<4x16xbf16>
    %cst_48 = arith.constant dense<0.000000e+00> : vector<4x16xf32>
    %75 = tpu.matmul %74, %72, %cst_48 {dimension_numbers = #tpu.dot_dimension_numbers<[1], [0], [0], [1], [0, 0, 1, 1], [], []>} : vector<4x16xbf16>, vector<16x16xbf16>, vector<4x16xf32> -> vector<4x16xf32>
    %76 = arith.truncf %75 : vector<4x16xf32> to vector<4x16xbf16>
    %c1_49 = arith.constant 1 : index
    %c0_50 = arith.constant 0 : index
    %c0_51 = arith.constant 0 : index
    %77 = vector.load %arg11[%c1_49, %c0_50, %c0_51] : memref<9x4x16xbf16, #tpu.memory_space<vmem>>, vector<1x4x16xbf16>
    %78 = vector.shape_cast %77 : vector<1x4x16xbf16> to vector<4x16xbf16>
    %cst_52 = arith.constant dense<0.000000e+00> : vector<4x16xf32>
    %79 = tpu.matmul %78, %72, %cst_52 {dimension_numbers = #tpu.dot_dimension_numbers<[1], [0], [0], [1], [0, 0, 1, 1], [], []>} : vector<4x16xbf16>, vector<16x16xbf16>, vector<4x16xf32> -> vector<4x16xf32>
    %80 = arith.truncf %79 : vector<4x16xf32> to vector<4x16xbf16>
    %c2_53 = arith.constant 2 : index
    %c0_54 = arith.constant 0 : index
    %c0_55 = arith.constant 0 : index
    %81 = vector.load %arg11[%c2_53, %c0_54, %c0_55] : memref<9x4x16xbf16, #tpu.memory_space<vmem>>, vector<1x4x16xbf16>
    %82 = vector.shape_cast %81 : vector<1x4x16xbf16> to vector<4x16xbf16>
    %cst_56 = arith.constant dense<0.000000e+00> : vector<4x16xf32>
    %83 = tpu.matmul %82, %72, %cst_56 {dimension_numbers = #tpu.dot_dimension_numbers<[1], [0], [0], [1], [0, 0, 1, 1], [], []>} : vector<4x16xbf16>, vector<16x16xbf16>, vector<4x16xf32> -> vector<4x16xf32>
    %84 = arith.truncf %83 : vector<4x16xf32> to vector<4x16xbf16>
    %c3_57 = arith.constant 3 : index
    %c0_58 = arith.constant 0 : index
    %c0_59 = arith.constant 0 : index
    %85 = vector.load %arg11[%c3_57, %c0_58, %c0_59] : memref<9x4x16xbf16, #tpu.memory_space<vmem>>, vector<1x4x16xbf16>
    %86 = vector.shape_cast %85 : vector<1x4x16xbf16> to vector<4x16xbf16>
    %cst_60 = arith.constant dense<0.000000e+00> : vector<4x16xf32>
    %87 = tpu.matmul %86, %72, %cst_60 {dimension_numbers = #tpu.dot_dimension_numbers<[1], [0], [0], [1], [0, 0, 1, 1], [], []>} : vector<4x16xbf16>, vector<16x16xbf16>, vector<4x16xf32> -> vector<4x16xf32>
    %88 = arith.truncf %87 : vector<4x16xf32> to vector<4x16xbf16>
    %c4_61 = arith.constant 4 : index
    %c0_62 = arith.constant 0 : index
    %c0_63 = arith.constant 0 : index
    %89 = vector.load %arg11[%c4_61, %c0_62, %c0_63] : memref<9x4x16xbf16, #tpu.memory_space<vmem>>, vector<1x4x16xbf16>
    %90 = vector.shape_cast %89 : vector<1x4x16xbf16> to vector<4x16xbf16>
    %cst_64 = arith.constant dense<0.000000e+00> : vector<4x16xf32>
    %91 = tpu.matmul %90, %72, %cst_64 {dimension_numbers = #tpu.dot_dimension_numbers<[1], [0], [0], [1], [0, 0, 1, 1], [], []>} : vector<4x16xbf16>, vector<16x16xbf16>, vector<4x16xf32> -> vector<4x16xf32>
    %92 = arith.truncf %91 : vector<4x16xf32> to vector<4x16xbf16>
    %c5_65 = arith.constant 5 : index
    %c0_66 = arith.constant 0 : index
    %c0_67 = arith.constant 0 : index
    %93 = vector.load %arg11[%c5_65, %c0_66, %c0_67] : memref<9x4x16xbf16, #tpu.memory_space<vmem>>, vector<1x4x16xbf16>
    %94 = vector.shape_cast %93 : vector<1x4x16xbf16> to vector<4x16xbf16>
    %cst_68 = arith.constant dense<0.000000e+00> : vector<4x16xf32>
    %95 = tpu.matmul %94, %72, %cst_68 {dimension_numbers = #tpu.dot_dimension_numbers<[1], [0], [0], [1], [0, 0, 1, 1], [], []>} : vector<4x16xbf16>, vector<16x16xbf16>, vector<4x16xf32> -> vector<4x16xf32>
    %96 = arith.truncf %95 : vector<4x16xf32> to vector<4x16xbf16>
    %c6_69 = arith.constant 6 : index
    %c0_70 = arith.constant 0 : index
    %c0_71 = arith.constant 0 : index
    %97 = vector.load %arg11[%c6_69, %c0_70, %c0_71] : memref<9x4x16xbf16, #tpu.memory_space<vmem>>, vector<1x4x16xbf16>
    %98 = vector.shape_cast %97 : vector<1x4x16xbf16> to vector<4x16xbf16>
    %cst_72 = arith.constant dense<0.000000e+00> : vector<4x16xf32>
    %99 = tpu.matmul %98, %72, %cst_72 {dimension_numbers = #tpu.dot_dimension_numbers<[1], [0], [0], [1], [0, 0, 1, 1], [], []>} : vector<4x16xbf16>, vector<16x16xbf16>, vector<4x16xf32> -> vector<4x16xf32>
    %100 = arith.truncf %99 : vector<4x16xf32> to vector<4x16xbf16>
    %c7_73 = arith.constant 7 : index
    %c0_74 = arith.constant 0 : index
    %c0_75 = arith.constant 0 : index
    %101 = vector.load %arg11[%c7_73, %c0_74, %c0_75] : memref<9x4x16xbf16, #tpu.memory_space<vmem>>, vector<1x4x16xbf16>
    %102 = vector.shape_cast %101 : vector<1x4x16xbf16> to vector<4x16xbf16>
    %cst_76 = arith.constant dense<0.000000e+00> : vector<4x16xf32>
    %103 = tpu.matmul %102, %72, %cst_76 {dimension_numbers = #tpu.dot_dimension_numbers<[1], [0], [0], [1], [0, 0, 1, 1], [], []>} : vector<4x16xbf16>, vector<16x16xbf16>, vector<4x16xf32> -> vector<4x16xf32>
    %104 = arith.truncf %103 : vector<4x16xf32> to vector<4x16xbf16>
    %c8_77 = arith.constant 8 : index
    %c0_78 = arith.constant 0 : index
    %c0_79 = arith.constant 0 : index
    %105 = vector.load %arg11[%c8_77, %c0_78, %c0_79] : memref<9x4x16xbf16, #tpu.memory_space<vmem>>, vector<1x4x16xbf16>
    %106 = vector.shape_cast %105 : vector<1x4x16xbf16> to vector<4x16xbf16>
    %cst_80 = arith.constant dense<0.000000e+00> : vector<4x16xf32>
    %107 = tpu.matmul %106, %72, %cst_80 {dimension_numbers = #tpu.dot_dimension_numbers<[1], [0], [0], [1], [0, 0, 1, 1], [], []>} : vector<4x16xbf16>, vector<16x16xbf16>, vector<4x16xf32> -> vector<4x16xf32>
    %108 = arith.truncf %107 : vector<4x16xf32> to vector<4x16xbf16>
    %109 = tpu.concatenate %76, %80, %84, %88, %92, %96, %100, %104, %108 in 1 : vector<4x16xbf16>, vector<4x16xbf16>, vector<4x16xbf16>, vector<4x16xbf16>, vector<4x16xbf16>, vector<4x16xbf16>, vector<4x16xbf16>, vector<4x16xbf16>, vector<4x16xbf16> -> vector<4x144xbf16>
    %c0_81 = arith.constant 0 : index
    %c0_82 = arith.constant 0 : index
    %110 = vector.load %arg4[%c0_81, %c0_82] : memref<144x32xbf16, #tpu.memory_space<vmem>>, vector<144x32xbf16>
    %cst_83 = arith.constant dense<0.000000e+00> : vector<4x32xf32>
    %111 = tpu.matmul %109, %110, %cst_83 {dimension_numbers = #tpu.dot_dimension_numbers<[1], [0], [0], [1], [0, 0, 1, 1], [], []>} : vector<4x144xbf16>, vector<144x32xbf16>, vector<4x32xf32> -> vector<4x32xf32>
    %c0_84 = arith.constant 0 : index
    %c0_85 = arith.constant 0 : index
    %112 = vector.load %arg8[%c0_84, %c0_85] : memref<1x32xf32, #tpu.memory_space<vmem>>, vector<1x32xf32>
    %113 = vector.broadcast %112 : vector<1x32xf32> to vector<4x32xf32>
    %114 = arith.addf %111, %113 : vector<4x32xf32>
    %cst_86 = arith.constant 2.000000e+01 : f32
    %115 = vector.broadcast %cst_86 : f32 to vector<4x32xf32>
    %116 = arith.minimumf %114, %115 : vector<4x32xf32>
    %117 = math.exp %116 : vector<4x32xf32>
    %cst_87 = arith.constant 2.000000e+00 : f32
    %118 = vector.broadcast %cst_87 : f32 to vector<4x32xf32>
    %119 = arith.addf %117, %118 : vector<4x32xf32>
    %120 = arith.mulf %117, %119 : vector<4x32xf32>
    %121 = arith.mulf %114, %120 : vector<4x32xf32>
    %cst_88 = arith.constant 2.000000e+00 : f32
    %122 = vector.broadcast %cst_88 : f32 to vector<4x32xf32>
    %123 = arith.addf %120, %122 : vector<4x32xf32>
    %124 = tpu.reciprocal %123 {approx = true} : vector<4x32xf32> -> vector<4x32xf32>
    %125 = arith.mulf %121, %124 : vector<4x32xf32>
    %126 = arith.truncf %125 : vector<4x32xf32> to vector<4x32xbf16>
    %c0_89 = arith.constant 0 : index
    %c0_90 = arith.constant 0 : index
    %c0_91 = arith.constant 0 : index
    %127 = vector.load %arg12[%c0_89, %c0_90, %c0_91] : memref<9x1x4xbf16, #tpu.memory_space<vmem>>, vector<1x1x4xbf16>
    %128 = vector.shape_cast %127 : vector<1x1x4xbf16> to vector<1x4xbf16>
    %cst_92 = arith.constant dense<0.000000e+00> : vector<1x32xf32>
    %129 = tpu.matmul %128, %126, %cst_92 {dimension_numbers = #tpu.dot_dimension_numbers<[1], [0], [0], [1], [0, 0, 1, 1], [], []>} : vector<1x4xbf16>, vector<4x32xbf16>, vector<1x32xf32> -> vector<1x32xf32>
    %130 = arith.truncf %129 : vector<1x32xf32> to vector<1x32xbf16>
    %c1_93 = arith.constant 1 : index
    %c0_94 = arith.constant 0 : index
    %c0_95 = arith.constant 0 : index
    %131 = vector.load %arg12[%c1_93, %c0_94, %c0_95] : memref<9x1x4xbf16, #tpu.memory_space<vmem>>, vector<1x1x4xbf16>
    %132 = vector.shape_cast %131 : vector<1x1x4xbf16> to vector<1x4xbf16>
    %cst_96 = arith.constant dense<0.000000e+00> : vector<1x32xf32>
    %133 = tpu.matmul %132, %126, %cst_96 {dimension_numbers = #tpu.dot_dimension_numbers<[1], [0], [0], [1], [0, 0, 1, 1], [], []>} : vector<1x4xbf16>, vector<4x32xbf16>, vector<1x32xf32> -> vector<1x32xf32>
    %134 = arith.truncf %133 : vector<1x32xf32> to vector<1x32xbf16>
    %c2_97 = arith.constant 2 : index
    %c0_98 = arith.constant 0 : index
    %c0_99 = arith.constant 0 : index
    %135 = vector.load %arg12[%c2_97, %c0_98, %c0_99] : memref<9x1x4xbf16, #tpu.memory_space<vmem>>, vector<1x1x4xbf16>
    %136 = vector.shape_cast %135 : vector<1x1x4xbf16> to vector<1x4xbf16>
    %cst_100 = arith.constant dense<0.000000e+00> : vector<1x32xf32>
    %137 = tpu.matmul %136, %126, %cst_100 {dimension_numbers = #tpu.dot_dimension_numbers<[1], [0], [0], [1], [0, 0, 1, 1], [], []>} : vector<1x4xbf16>, vector<4x32xbf16>, vector<1x32xf32> -> vector<1x32xf32>
    %138 = arith.truncf %137 : vector<1x32xf32> to vector<1x32xbf16>
    %c3_101 = arith.constant 3 : index
    %c0_102 = arith.constant 0 : index
    %c0_103 = arith.constant 0 : index
    %139 = vector.load %arg12[%c3_101, %c0_102, %c0_103] : memref<9x1x4xbf16, #tpu.memory_space<vmem>>, vector<1x1x4xbf16>
    %140 = vector.shape_cast %139 : vector<1x1x4xbf16> to vector<1x4xbf16>
    %cst_104 = arith.constant dense<0.000000e+00> : vector<1x32xf32>
    %141 = tpu.matmul %140, %126, %cst_104 {dimension_numbers = #tpu.dot_dimension_numbers<[1], [0], [0], [1], [0, 0, 1, 1], [], []>} : vector<1x4xbf16>, vector<4x32xbf16>, vector<1x32xf32> -> vector<1x32xf32>
    %142 = arith.truncf %141 : vector<1x32xf32> to vector<1x32xbf16>
    %c4_105 = arith.constant 4 : index
    %c0_106 = arith.constant 0 : index
    %c0_107 = arith.constant 0 : index
    %143 = vector.load %arg12[%c4_105, %c0_106, %c0_107] : memref<9x1x4xbf16, #tpu.memory_space<vmem>>, vector<1x1x4xbf16>
    %144 = vector.shape_cast %143 : vector<1x1x4xbf16> to vector<1x4xbf16>
    %cst_108 = arith.constant dense<0.000000e+00> : vector<1x32xf32>
    %145 = tpu.matmul %144, %126, %cst_108 {dimension_numbers = #tpu.dot_dimension_numbers<[1], [0], [0], [1], [0, 0, 1, 1], [], []>} : vector<1x4xbf16>, vector<4x32xbf16>, vector<1x32xf32> -> vector<1x32xf32>
    %146 = arith.truncf %145 : vector<1x32xf32> to vector<1x32xbf16>
    %c5_109 = arith.constant 5 : index
    %c0_110 = arith.constant 0 : index
    %c0_111 = arith.constant 0 : index
    %147 = vector.load %arg12[%c5_109, %c0_110, %c0_111] : memref<9x1x4xbf16, #tpu.memory_space<vmem>>, vector<1x1x4xbf16>
    %148 = vector.shape_cast %147 : vector<1x1x4xbf16> to vector<1x4xbf16>
    %cst_112 = arith.constant dense<0.000000e+00> : vector<1x32xf32>
    %149 = tpu.matmul %148, %126, %cst_112 {dimension_numbers = #tpu.dot_dimension_numbers<[1], [0], [0], [1], [0, 0, 1, 1], [], []>} : vector<1x4xbf16>, vector<4x32xbf16>, vector<1x32xf32> -> vector<1x32xf32>
    %150 = arith.truncf %149 : vector<1x32xf32> to vector<1x32xbf16>
    %c6_113 = arith.constant 6 : index
    %c0_114 = arith.constant 0 : index
    %c0_115 = arith.constant 0 : index
    %151 = vector.load %arg12[%c6_113, %c0_114, %c0_115] : memref<9x1x4xbf16, #tpu.memory_space<vmem>>, vector<1x1x4xbf16>
    %152 = vector.shape_cast %151 : vector<1x1x4xbf16> to vector<1x4xbf16>
    %cst_116 = arith.constant dense<0.000000e+00> : vector<1x32xf32>
    %153 = tpu.matmul %152, %126, %cst_116 {dimension_numbers = #tpu.dot_dimension_numbers<[1], [0], [0], [1], [0, 0, 1, 1], [], []>} : vector<1x4xbf16>, vector<4x32xbf16>, vector<1x32xf32> -> vector<1x32xf32>
    %154 = arith.truncf %153 : vector<1x32xf32> to vector<1x32xbf16>
    %c7_117 = arith.constant 7 : index
    %c0_118 = arith.constant 0 : index
    %c0_119 = arith.constant 0 : index
    %155 = vector.load %arg12[%c7_117, %c0_118, %c0_119] : memref<9x1x4xbf16, #tpu.memory_space<vmem>>, vector<1x1x4xbf16>
    %156 = vector.shape_cast %155 : vector<1x1x4xbf16> to vector<1x4xbf16>
    %cst_120 = arith.constant dense<0.000000e+00> : vector<1x32xf32>
    %157 = tpu.matmul %156, %126, %cst_120 {dimension_numbers = #tpu.dot_dimension_numbers<[1], [0], [0], [1], [0, 0, 1, 1], [], []>} : vector<1x4xbf16>, vector<4x32xbf16>, vector<1x32xf32> -> vector<1x32xf32>
    %158 = arith.truncf %157 : vector<1x32xf32> to vector<1x32xbf16>
    %c8_121 = arith.constant 8 : index
    %c0_122 = arith.constant 0 : index
    %c0_123 = arith.constant 0 : index
    %159 = vector.load %arg12[%c8_121, %c0_122, %c0_123] : memref<9x1x4xbf16, #tpu.memory_space<vmem>>, vector<1x1x4xbf16>
    %160 = vector.shape_cast %159 : vector<1x1x4xbf16> to vector<1x4xbf16>
    %cst_124 = arith.constant dense<0.000000e+00> : vector<1x32xf32>
    %161 = tpu.matmul %160, %126, %cst_124 {dimension_numbers = #tpu.dot_dimension_numbers<[1], [0], [0], [1], [0, 0, 1, 1], [], []>} : vector<1x4xbf16>, vector<4x32xbf16>, vector<1x32xf32> -> vector<1x32xf32>
    %162 = arith.truncf %161 : vector<1x32xf32> to vector<1x32xbf16>
    %163 = tpu.concatenate %130, %134, %138, %142, %146, %150, %154, %158, %162 in 1 : vector<1x32xbf16>, vector<1x32xbf16>, vector<1x32xbf16>, vector<1x32xbf16>, vector<1x32xbf16>, vector<1x32xbf16>, vector<1x32xbf16>, vector<1x32xbf16>, vector<1x32xbf16> -> vector<1x288xbf16>
    %c0_125 = arith.constant 0 : index
    %c0_126 = arith.constant 0 : index
    %164 = vector.load %arg5[%c0_125, %c0_126] : memref<288x32xbf16, #tpu.memory_space<vmem>>, vector<288x32xbf16>
    %cst_127 = arith.constant dense<0.000000e+00> : vector<1x32xf32>
    %165 = tpu.matmul %163, %164, %cst_127 {dimension_numbers = #tpu.dot_dimension_numbers<[1], [0], [0], [1], [0, 0, 1, 1], [], []>} : vector<1x288xbf16>, vector<288x32xbf16>, vector<1x32xf32> -> vector<1x32xf32>
    %c0_128 = arith.constant 0 : index
    %c0_129 = arith.constant 0 : index
    %166 = vector.load %arg9[%c0_128, %c0_129] : memref<1x32xf32, #tpu.memory_space<vmem>>, vector<1x32xf32>
    %167 = arith.addf %165, %166 : vector<1x32xf32>
    %cst_130 = arith.constant 2.000000e+01 : f32
    %168 = vector.broadcast %cst_130 : f32 to vector<1x32xf32>
    %169 = arith.minimumf %167, %168 : vector<1x32xf32>
    %170 = math.exp %169 : vector<1x32xf32>
    %cst_131 = arith.constant 2.000000e+00 : f32
    %171 = vector.broadcast %cst_131 : f32 to vector<1x32xf32>
    %172 = arith.addf %170, %171 : vector<1x32xf32>
    %173 = arith.mulf %170, %172 : vector<1x32xf32>
    %174 = arith.mulf %167, %173 : vector<1x32xf32>
    %cst_132 = arith.constant 2.000000e+00 : f32
    %175 = vector.broadcast %cst_132 : f32 to vector<1x32xf32>
    %176 = arith.addf %173, %175 : vector<1x32xf32>
    %177 = tpu.reciprocal %176 {approx = true} : vector<1x32xf32> -> vector<1x32xf32>
    %178 = arith.mulf %174, %177 : vector<1x32xf32>
    %179 = arith.truncf %178 : vector<1x32xf32> to vector<1x32xbf16>
    %c0_133 = arith.constant 0 : index
    %c0_134 = arith.constant 0 : index
    %180 = vector.load %arg13[%c0_133, %c0_134] : memref<32x32xbf16, #tpu.memory_space<vmem>>, vector<32x32xbf16>
    %cst_135 = arith.constant dense<0.000000e+00> : vector<1x32xf32>
    %181 = tpu.matmul %179, %180, %cst_135 {dimension_numbers = #tpu.dot_dimension_numbers<[1], [0], [0], [1], [0, 0, 1, 1], [], []>} : vector<1x32xbf16>, vector<32x32xbf16>, vector<1x32xf32> -> vector<1x32xf32>
    %c0_136 = arith.constant 0 : index
    %c0_137 = arith.constant 0 : index
    %182 = vector.load %arg14[%c0_136, %c0_137] : memref<1x32xf32, #tpu.memory_space<vmem>>, vector<1x32xf32>
    %183 = arith.addf %181, %182 : vector<1x32xf32>
    %c0_138 = arith.constant 0 : index
    %c0_139 = arith.constant 0 : index
    %c0_140 = arith.constant 0 : index
    %184 = vector.load %arg15[%c0_138, %c0_139, %c0_140] : memref<1x1x32xf32, #tpu.memory_space<vmem>>, vector<1x1x32xf32>
    %185 = vector.shape_cast %184 : vector<1x1x32xf32> to vector<1x32xf32>
    %186 = vector.shape_cast %183 : vector<1x32xf32> to vector<1x1x32xf32>
    tpu.vector_store %arg15[%c0_138, %c0_139, %c0_140], %186 {strides = array<i32>} : memref<1x1x32xf32, #tpu.memory_space<vmem>>, vector<1x1x32xf32>,
    return
  }
  func.func @transform_0(%arg0: i32) -> (i32, i32, i32) {
    %c0_i32 = arith.constant 0 : i32
    %c0_i32_0 = arith.constant 0 : i32
    %c0_i32_1 = arith.constant 0 : i32
    return %arg0, %c0_i32, %c0_i32_0 : i32, i32, i32
  }
  func.func @transform_1(%arg0: i32) -> (i32, i32) {
    %c0_i32 = arith.constant 0 : i32
    %c0_i32_0 = arith.constant 0 : i32
    %c0_i32_1 = arith.constant 0 : i32
    return %c0_i32, %c0_i32_0 : i32, i32
  }
  func.func @transform_2(%arg0: i32) -> (i32, i32) {
    %c0_i32 = arith.constant 0 : i32
    %c0_i32_0 = arith.constant 0 : i32
    %c0_i32_1 = arith.constant 0 : i32
    return %c0_i32, %c0_i32_0 : i32, i32
  }
  func.func @transform_3(%arg0: i32) -> (i32, i32) {
    %c0_i32 = arith.constant 0 : i32
    %c0_i32_0 = arith.constant 0 : i32
    %c0_i32_1 = arith.constant 0 : i32
    return %c0_i32, %c0_i32_0 : i32, i32
  }
  func.func @transform_4(%arg0: i32) -> (i32, i32) {
    %c0_i32 = arith.constant 0 : i32
    %c0_i32_0 = arith.constant 0 : i32
    %c0_i32_1 = arith.constant 0 : i32
    return %c0_i32, %c0_i32_0 : i32, i32
  }
  func.func @transform_5(%arg0: i32) -> (i32, i32) {
    %c0_i32 = arith.constant 0 : i32
    %c0_i32_0 = arith.constant 0 : i32
    %c0_i32_1 = arith.constant 0 : i32
    return %c0_i32, %c0_i32_0 : i32, i32
  }
  func.func @transform_6(%arg0: i32) -> (i32, i32) {
    %c0_i32 = arith.constant 0 : i32
    %c0_i32_0 = arith.constant 0 : i32
    %c0_i32_1 = arith.constant 0 : i32
    return %c0_i32, %c0_i32_0 : i32, i32
  }
  func.func @transform_7(%arg0: i32) -> (i32, i32) {
    %c0_i32 = arith.constant 0 : i32
    %c0_i32_0 = arith.constant 0 : i32
    %c0_i32_1 = arith.constant 0 : i32
    return %c0_i32, %c0_i32_0 : i32, i32
  }
  func.func @transform_8(%arg0: i32) -> (i32, i32) {
    %c0_i32 = arith.constant 0 : i32
    %c0_i32_0 = arith.constant 0 : i32
    %c0_i32_1 = arith.constant 0 : i32
    return %c0_i32, %c0_i32_0 : i32, i32
  }
  func.func @transform_9(%arg0: i32) -> (i32, i32, i32) {
    %c0_i32 = arith.constant 0 : i32
    %c0_i32_0 = arith.constant 0 : i32
    %c0_i32_1 = arith.constant 0 : i32
    %c0_i32_2 = arith.constant 0 : i32
    return %c0_i32, %c0_i32_0, %c0_i32_1 : i32, i32, i32
  }
  func.func @transform_10(%arg0: i32) -> (i32, i32, i32) {
    %c0_i32 = arith.constant 0 : i32
    %c0_i32_0 = arith.constant 0 : i32
    %c0_i32_1 = arith.constant 0 : i32
    %c0_i32_2 = arith.constant 0 : i32
    return %c0_i32, %c0_i32_0, %c0_i32_1 : i32, i32, i32
  }
  func.func @transform_11(%arg0: i32) -> (i32, i32, i32) {
    %c0_i32 = arith.constant 0 : i32
    %c0_i32_0 = arith.constant 0 : i32
    %c0_i32_1 = arith.constant 0 : i32
    %c0_i32_2 = arith.constant 0 : i32
    return %c0_i32, %c0_i32_0, %c0_i32_1 : i32, i32, i32
  }
  func.func @transform_12(%arg0: i32) -> (i32, i32) {
    %c0_i32 = arith.constant 0 : i32
    %c0_i32_0 = arith.constant 0 : i32
    %c0_i32_1 = arith.constant 0 : i32
    return %c0_i32, %c0_i32_0 : i32, i32
  }
  func.func @transform_13(%arg0: i32) -> (i32, i32) {
    %c0_i32 = arith.constant 0 : i32
    %c0_i32_0 = arith.constant 0 : i32
    %c0_i32_1 = arith.constant 0 : i32
    return %c0_i32, %c0_i32_0 : i32, i32
  }
  func.func @transform_14(%arg0: i32) -> (i32, i32, i32) {
    %c0_i32 = arith.constant 0 : i32
    %c0_i32_0 = arith.constant 0 : i32
    %c0_i32_1 = arith.constant 0 : i32
    return %arg0, %c0_i32, %c0_i32_0 : i32, i32, i32
  }
}

</mosaic_0001>

<bundles_post_ra>
// kernel: feat_map_to_latent.1
= control target key start
LH: loop header
LB: loop body
LE: loop exit
PB: predicated region body
PF: predicated region fallthrough
CT: control target
= control target key end

     0   :  { %s4126_s0 = inlined_call_operand.vmem [shape: bf16[2,64,36], index: 0, kind: input, shape index: {}]   ;;  %s4127_s1 = inlined_call_operand.vmem [shape: bf16[36,8], index: 1, kind: input, shape index: {}]   ;;  %s4128_s2 = inlined_call_operand.vmem [shape: bf16[72,16], index: 2, kind: input, shape index: {}]   ;;  %s4129_s3 = inlined_call_operand.vmem [shape: bf16[144,32], index: 3, kind: input, shape index: {}]   ;;  %s4130_s4 = inlined_call_operand.vmem [shape: bf16[288,32], index: 4, kind: input, shape index: {}]   ;;  %s4131_s5 = inlined_call_operand.vmem [shape: f32[1,8], index: 5, kind: input, shape index: {}]   ;;  %s4132_s6 = inlined_call_operand.vmem [shape: f32[1,16], index: 6, kind: input, shape index: {}]   ;;  %s4133_s7 = inlined_call_operand.vmem [shape: f32[1,32], index: 7, kind: input, shape index: {}]   ;;  %s4134_s8 = inlined_call_operand.vmem [shape: f32[1,32], index: 8, kind: input, shape index: {}]   ;;  %s4135_s9 = inlined_call_operand.vmem [shape: bf16[9,16,64], index: 9, kind: input, shape index: {}]   ;;  %s4136_s10 = inlined_call_operand.vmem [shape: bf16[9,4,16], index: 10, kind: input, shape index: {}]   ;;  %s4137_s11 = inlined_call_operand.vmem [shape: bf16[9,1,4], index: 11, kind: input, shape index: {}]   ;;  %s4138_s12 = inlined_call_operand.vmem [shape: bf16[32,32], index: 12, kind: input, shape index: {}]   ;;  %s4139_s13 = inlined_call_operand.vmem [shape: f32[1,32], index: 13, kind: input, shape index: {}]   ;;  %s4140_s14 = inlined_call_operand.hbm [shape: f32[2,1,32], index: 14, kind: output, shape index: {}]  }
   0x1   :  { %4148 = sst [smem:[#allocation7_spill]] %s4126_s0 }
   0x2   :  { %19 = vsyncpa [#allocation3], 0 }
   0x3   :  { %21 = vsyncpa [#allocation3 + $0x1], 0  ;;  %s3536_s29 = smov 0   ;;  %s3538_s30 = smov 0  }
   0x4   :  { %s3540_s15 = smov 0   ;;  %s3542_s16 = smov 0  }
   0x5 LB: > { %4149 = sst [smem:[#allocation5_spill]] %s3440_s15  ;;  %s3557_s17 = sadd.s32 4294967295, %s3444_s16   ;;  %s3444_s16 = sphi %s3542_s16, %s4161_s16   ;;  %s3440_s15 = sphi %s3540_s15, %s4158_s15   ;;  %s3436_s30 = sphi %s3538_s30, %s4160_s30   ;;  %s3432_s29 = sphi %s3536_s29, %s4159_s29  }
   0x6   : > { %s2718_s18 = sadd.s32 4294967294, %s3444_s16   ;;  %s3561_s19 = sadd.s32 1, %s3444_s16  }
   0x7   : > { %s333_s20 = sadd.s32 1, %s3440_s15  ;;  %s330_s21 = ssub.s32 %s3444_s16, %s3561_s19 }
   0x8   : > { %p343_p0 = scmp.ne.s32.totalorder %s3440_s15, %s3436_s30  ;;  %p331_p1 = scmp.eq.s32.totalorder %s330_s21, 0 }
   0x9   : > { %p344_p2 = scmp.eq.s32.totalorder %s3557_s17, 1  ;;  %p349_p3 = scmp.ne.s32.totalorder %s3436_s30, %s3432_s29 }
   0xa   : > { %p350_p4 = scmp.eq.s32.totalorder %s2718_s18, 1  ;;  %p2721_p7 = scmp.ge.s32.totalorder %s3444_s16, 1 }
   0xb   : > { %s3572_s22 = scalar_select %p331_p1, %s3440_s15, %s333_s20  }
   0xc   : > { %p3574_p5 = por %p344_p2, %p343_p0  ;;  %p3578_p6 = por %p350_p4, %p349_p3 }
   0xd   : > { %4150 = sst [smem:[#allocation6_spill]] %s3572_s22  ;;  %p415_p8 = scmp.lt.s32.totalorder %s3444_s16, 3 }
   0xf   : > { %p416_p9 = pnand %p2721_p7, %p415_p8 }
  0x10   : > { %v3284_v0 = vld [vmem:[%s4127_s1] sm:$0xff] (!%p416_p9)   ;;  %v3285_v1 = vld [vmem:[%s4127_s1 + $0x8] sm:$0xff] (!%p416_p9)   ;;  %p460_p10 = scmp.lt.s32.totalorder (!%p416_p9), %s3557_s17, 1  ;;  %v3286_v2 = vld [vmem:[%s4127_s1 + $0x10] ss:$0 sps:$4 sm:$0x33] (!%p416_p9)  }
  0x11   : > { %419 = sbr.rel (%p416_p9) target bundleno = 2427 (0x97b), region = 76  ;;  %2970 = vmatprep.subr.bf16.mxu0 (!%p416_p9), %v3284_v0  ;;  %vm534_vm0 = vcmask (!%p416_p9), 1041408   ;;  %vm521_vm1 = vcmask (!%p416_p9), 293888   ;;  %s4153_s0 = sld [smem:[#allocation7_spill]] (!%p416_p9)  ;;  %v3446_v8 = vmov (!%p416_p9), 0.0   ;;  %vm3447_vm2 = vmmov (!%p416_p9), 0  }
  0x12   : > { %2971 = vmatpush3.bf16.msra.mxu0 (!%p416_p9), %v3284_v0  ;;  %v536_v4 = vsel (!%p416_p9), %vm534_vm0, %v3286_v2, 0  ;;  %2984 = vmatprep.subr.bf16.mxu1 (!%p416_p9), %v3446_v8  ;;  %v2724_v9 = vld [vmem:[%s4131_s5] ss:$0 sm:$0xff] (!%p416_p9)  ;;  %vm686_vm3 = vcmask (!%p416_p9), 523264   ;;  %s3449_s28 = smov (!%p416_p9), 16   ;;  %s3450_s18 = smov (!%p416_p9), 24  }
  0x13   : > { %2972 = vmatprep.subr.bf16.mxu0 (!%p416_p9), %v3285_v1  ;;  %2992 = vmatprep.mubr.msk.bf16.mxu1 (!%p416_p9), %vm3447_vm2, %v3446_v8  ;;  %s4142_s25 = smov (!%p416_p9), 32   ;;  %s3452_s26 = smov (!%p416_p9), 40   ;;  %vm1250_vm4 = vcmask (!%p416_p9), 1043456   ;;  %vm1180_vm5 = vcmask (!%p416_p9), 64512   ;;  %vm1184_vm6 = vcmask (!%p416_p9), 130048   ;;  %vm1187_vm7 = vcmask (!%p416_p9), 195584  }
  0x14   : > { %s4146_s27 = smov (!%p416_p9), 64   ;;  %vm1190_vm8 = vcmask (!%p416_p9), 261120   ;;  %vm1193_vm9 = vcmask (!%p416_p9), 326656   ;;  %vm1196_vm10 = vcmask (!%p416_p9), 392192   ;;  %vm1199_vm11 = vcmask (!%p416_p9), 457728  }
  0x15   : > { %vm1247_vm12 = vcmask (!%p416_p9), 588800   ;;  %vm1757_vm13 = vcmask (!%p416_p9), 654336   ;;  %vm1760_vm14 = vcmask (!%p416_p9), 785408   ;;  %vm1763_vm15 = vcmask (!%p416_p9), 916480  }
  0x16   : > { %2973 = vmatpush3.bf16.msra.mxu0 (!%p416_p9), %v3285_v1 }
  0x17   : > { %3230 = vmatprep.subr.msk.bf16.mxu0 (!%p416_p9), %vm534_vm0, %v3286_v2 }
  0x18   : > { %s461_s21 = scalar_select %p460_p10, %s3557_s17, 1 }
  0x1a   : > { %s2847_s22 = sshll.u32 %s461_s21, 5  ;;  %2975 = vmatpush3.bf16.msra.mxu0 %v536_v4  ;;  %s3458_s21 = smov 80  }
  0x1b   : > { %s464_s15 = scalar_lea.vmem %s4153_s0, %s2847_s22  ;;  %2996 = vmatprep.subr.bf16.mxu0 %v3446_v8  ;;  %s3453_s22 = smov 48  }
  0x1c   : > { %v3287_v3 = vld [vmem:[%s464_s15] sm:$0xff]   ;;  %v3288_v5 = vld [vmem:[%s464_s15 + $0x8] sm:$0xff]   ;;  %v3289_v6 = vld [vmem:[%s464_s15 + $0x10] sm:$0xff]  }
  0x1d   : > { %2976 = vmatprep.mubr.msk.bf16.mxu0 %vm521_vm1, %v3287_v3  ;;  %v3290_v7 = vld [vmem:[%s464_s15 + $0x18] sm:$0xff]   ;;  %s3448_s15 = smov 8  }
  0x1e   : > { %2977 = vmatmul.mubr.msk.bf16.vlgmr.msra.gmra.mrb[0].mxu0 %vm521_vm1, %v3288_v5 }
  0x1f   : > { %2980 = vmatprep.mubr.msk.bf16.mxu0 %vm521_vm1, %v3289_v6 }
  0x26   : > { %2981 = vmatmul.mubr.msk.bf16.gmra.mrb[4].mxu0 %vm521_vm1, %v3290_v7  ;;  %vm1900_vm1 = vcmask 31744  }
  0x27   : > { %3004 = vmatprep.mubr.msk.bf16.mxu0 %vm3447_vm2, %v3446_v8 }
  0xf1   : > { %v2978_v10 = vpop.f32.mrb[0].mxu0 }
  0xf2   : > { %v3609_v11 = vadd.f32 %v2978_v10, %v2724_v9  ;;  %v572_v12 = vpop.f32.mrb[1].mxu0 }
  0xf3   : > { %v3611_v13 = vadd.f32 %v2724_v9, %v572_v12  ;;  %v2979_v14 = vpop.f32.mrb[2].mxu0 }
  0xf4   : > { %v605_v15 = vmin.f32 %v3609_v11, 20.0  ;;  %v3614_v16 = vadd.f32 %v2979_v14, %v2724_v9  ;;  %v575_v17 = vpop.f32.mrb[3].mxu0 }
  0xf5   : > { %v603_v18 = vmin.f32 %v3611_v13, 20.0  ;;  %v3617_v19 = vadd.f32 %v2724_v9, %v575_v17 }
  0xf6   : > { %v615_v20 = vmul.f32 1.442695, %v605_v15  ;;  %v606_v21 = vmin.f32 %v3614_v16, 20.0 }
  0xf7   : > { %v611_v22 = vmul.f32 1.442695, %v603_v18  ;;  %v604_v23 = vmin.f32 %v3617_v19, 20.0 }
  0xf8   : > { %3334 = vpow2.f32 %v615_v20  ;;  %v617_v24 = vmul.f32 1.442695, %v606_v21 }
  0xf9   : > { %3336 = vpow2.f32 %v611_v22  ;;  %v613_v25 = vmul.f32 1.442695, %v604_v23  ;;  %v2982_v26 = vpop.f32.mrb[4].mxu0 }
  0xfa   : > { %3338 = vpow2.f32 %v617_v24  ;;  %v3621_v27 = vadd.f32 %v2982_v26, %v2724_v9  ;;  %v588_v28 = vpop.f32.mrb[5].mxu0 }
  0xfb   : > { %3340 = vpow2.f32 %v613_v25  ;;  %v3623_v29 = vadd.f32 %v2724_v9, %v588_v28  ;;  %v2983_v30 = vpop.f32.mrb[6].mxu0 }
  0xfc   : > { %v609_v31 = vmin.f32 %v3621_v27, 20.0  ;;  %v3626_v32 = vadd.f32 %v2983_v30, %v2724_v9  ;;  %v591_v33 = vpop.f32.mrb[7].mxu0 }
  0xfd   : > { %v607_v34 = vmin.f32 %v3623_v29, 20.0  ;;  %v3629_v35 = vadd.f32 %v2724_v9, %v591_v33 }
  0xfe   : > { %v623_v36 = vmul.f32 1.442695, %v609_v31  ;;  %v610_v37 = vmin.f32 %v3626_v32, 20.0 }
  0xff   : > { %v619_v38 = vmul.f32 1.442695, %v607_v34  ;;  %v608_v39 = vmin.f32 %v3629_v35, 20.0 }
 0x100   : > { %3342 = vpow2.f32 %v623_v36  ;;  %v625_v40 = vmul.f32 1.442695, %v610_v37 }
 0x101   : > { %3344 = vpow2.f32 %v619_v38  ;;  %v621_v41 = vmul.f32 1.442695, %v608_v39 }
 0x102   : > { %v3335_v42 = vpop.eup %3334  ;;  %3346 = vpow2.f32 %v625_v40 }
 0x103   : > { %v3337_v43 = vpop.eup %3336  ;;  %v629_v44 = vadd.f32 2.0, %v3335_v42  ;;  %3348 = vpow2.f32 %v621_v41  ;;  %v3293_v41 = vld [vmem:[%s4135_s9 + $0x10] sm:$0xff]  }
 0x104   : > { %v3339_v45 = vpop.eup %3338  ;;  %v627_v46 = vadd.f32 2.0, %v3337_v43 }
 0x105   : > { %v3341_v47 = vpop.eup %3340  ;;  %v637_v48 = vmul.f32 %v3335_v42, %v629_v44  ;;  %v630_v49 = vadd.f32 2.0, %v3339_v45  ;;  %v3294_v42 = vld [vmem:[%s4135_s9 + $0x18] sm:$0xff]   ;;  %v3296_v44 = vld [vmem:[%s4135_s9 + $0x28] sm:$0xff]  }
 0x106   : > { %v635_v50 = vmul.f32 %v3337_v43, %v627_v46  ;;  %v628_v51 = vadd.f32 2.0, %v3341_v47  ;;  %v3295_v43 = vld [vmem:[%s4135_s9 + $0x20] sm:$0xff]   ;;  %v3298_v46 = vld [vmem:[%s4135_s9 + $0x38] sm:$0xff]  }
 0x107   : > { %v653_v52 = vadd.f32 2.0, %v637_v48  ;;  %v638_v53 = vmul.f32 %v3339_v45, %v630_v49  ;;  %v645_v15 = vmul.f32 %v637_v48, %v3609_v11  ;;  %v3297_v45 = vld [vmem:[%s4135_s9 + $0x30] sm:$0xff]  }
 0x108   : > { %v651_v54 = vadd.f32 2.0, %v635_v50  ;;  %v636_v55 = vmul.f32 %v3341_v47, %v628_v51  ;;  %v643_v20 = vmul.f32 %v635_v50, %v3611_v13  ;;  %v3299_v47 = vld [vmem:[%s4135_s9 + $0x40] sm:$0xff]  }
 0x109   : > { %3350 = vrcp.f32 %v653_v52  ;;  %v654_v56 = vadd.f32 2.0, %v638_v53  ;;  %v646_v17 = vmul.f32 %v638_v53, %v3614_v16 }
 0x10a   : > { %v3343_v57 = vpop.eup %3342  ;;  %3352 = vrcp.f32 %v651_v54  ;;  %v652_v58 = vadd.f32 2.0, %v636_v55  ;;  %v644_v21 = vmul.f32 %v636_v55, %v3617_v19 }
 0x10b   : > { %v3345_v59 = vpop.eup %3344  ;;  %3354 = vrcp.f32 %v654_v56  ;;  %v633_v60 = vadd.f32 2.0, %v3343_v57 }
 0x10c   : > { %v3347_v61 = vpop.eup %3346  ;;  %3356 = vrcp.f32 %v652_v58  ;;  %v631_v62 = vadd.f32 2.0, %v3345_v59 }
 0x10d   : > { %v3349_v63 = vpop.eup %3348  ;;  %v641_v0 = vmul.f32 %v3343_v57, %v633_v60  ;;  %v634_v1 = vadd.f32 2.0, %v3347_v61 }
 0x10e   : > { %v639_v2 = vmul.f32 %v3345_v59, %v631_v62  ;;  %v632_v3 = vadd.f32 2.0, %v3349_v63 }
 0x10f   : > { %v657_v4 = vadd.f32 2.0, %v641_v0  ;;  %v642_v5 = vmul.f32 %v3347_v61, %v634_v1  ;;  %v649_v16 = vmul.f32 %v641_v0, %v3621_v27 }
 0x110   : > { %v655_v6 = vadd.f32 2.0, %v639_v2  ;;  %v640_v7 = vmul.f32 %v3349_v63, %v632_v3  ;;  %v647_v33 = vmul.f32 %v639_v2, %v3623_v29  ;;  %v3291_v29 = vld [vmem:[%s4135_s9] sm:$0xff]  }
 0x111   : > { %3358 = vrcp.f32 %v657_v4  ;;  %v658_v9 = vadd.f32 2.0, %v642_v5  ;;  %v650_v13 = vmul.f32 %v642_v5, %v3626_v32  ;;  %v3300_v4 = vld [vmem:[%s4128_s2] sm:$0xff]  }
 0x112   : > { %3360 = vrcp.f32 %v655_v6  ;;  %v656_v10 = vadd.f32 2.0, %v640_v7  ;;  %v648_v34 = vmul.f32 %v640_v7, %v3629_v35  ;;  %v3292_v35 = vld [vmem:[%s4135_s9 + $0x8] sm:$0xff]  }
 0x113   : > { %v3351_v12 = vpop.eup %3350  ;;  %3362 = vrcp.f32 %v658_v9 }
 0x114   : > { %v3353_v14 = vpop.eup %3352  ;;  %3364 = vrcp.f32 %v656_v10  ;;  %v669_v23 = vmul.f32 %v3351_v12, %v645_v15 }
 0x115   : > { %v3355_v18 = vpop.eup %3354  ;;  %v667_v25 = vmul.f32 %v3353_v14, %v643_v20  ;;  %v3301_v20 = vld [vmem:[%s4128_s2 + $0x8] sm:$0xff]  }
 0x116   : > { %v3357_v22 = vpop.eup %3356  ;;  %v670_v24 = vmul.f32 %v3355_v18, %v646_v17 }
 0x117   : > { %v668_v26 = vmul.f32 %v3357_v22, %v644_v21  ;;  %v3302_v21 = vld [vmem:[%s4128_s2 + $0x10] sm:$0xff]   ;;  %v3303_v22 = vld [vmem:[%s4128_s2 + $0x18] sm:$0xff]  }
 0x118   : > { %v3637_v28 = vpack.c.bf16 %v670_v24, %v669_v23  ;;  %v3304_v23 = vld [vmem:[%s4128_s2 + $0x20] ss:$0 sps:$4 sm:$0xff]  }
 0x119   : > { %v3639_v30 = vpack.c.bf16 %v668_v26, %v667_v25 }
 0x11b   : > { %v3359_v31 = vpop.eup %3358  ;;  %2985 = vmatpush3.bf16.msra.mxu1 %v3639_v30  ;;  %2997 = vmatpush3.bf16.msra.mxu0 %v3639_v30 }
 0x11c   : > { %v3361_v11 = vpop.eup %3360  ;;  %2986 = vmatprep.subr.bf16.mxu1 %v3446_v8  ;;  %2998 = vmatprep.subr.bf16.mxu0 %v3446_v8  ;;  %v673_v37 = vmul.f32 %v3359_v31, %v649_v16 }
 0x11d   : > { %v3363_v19 = vpop.eup %3362  ;;  %v671_v39 = vmul.f32 %v3361_v11, %v647_v33  ;;  %v1252_v33 = vsel %vm1250_vm4, %v3304_v23, 0  ;;  %v2780_v23 = vld [vmem:[%s4136_s10 + $0x4] sm:$0x3] }
 0x11e   : > { %v3365_v36 = vpop.eup %3364  ;;  %v674_v38 = vmul.f32 %v3363_v19, %v650_v13 }
 0x11f   : > { %v672_v40 = vmul.f32 %v3365_v36, %v648_v34  ;;  %2987 = vmatpush3.bf16.msra.mxu1 %v3637_v28  ;;  %2999 = vmatpush3.bf16.msra.mxu0 %v3637_v28 }
 0x120   : > { %v3651_v27 = vpack.c.bf16 %v674_v38, %v673_v37  ;;  %2988 = vmatprep.subr.bf16.mxu1 %v3446_v8  ;;  %3000 = vmatprep.subr.bf16.mxu0 %v3446_v8 }
 0x121   : > { %v3655_v32 = vpack.c.bf16 %v672_v40, %v671_v39 }
 0x123   : > { %2989 = vmatpush3.bf16.msra.mxu1 %v3655_v32  ;;  %3001 = vmatpush3.bf16.msra.mxu0 %v3655_v32 }
 0x124   : > { %2990 = vmatprep.subr.bf16.mxu1 %v3446_v8  ;;  %3002 = vmatprep.subr.bf16.mxu0 %v3446_v8 }
 0x127   : > { %2991 = vmatpush3.bf16.msra.mxu1 %v3651_v27  ;;  %3003 = vmatpush3.bf16.msra.mxu0 %v3651_v27 }
 0x128   : > { %3008 = vmatprep.subr.bf16.mxu1 %v3446_v8  ;;  %3020 = vmatprep.subr.bf16.mxu0 %v3446_v8 }
 0x12a   : > { %2993 = vmatmul.mubr.msk.bf16.vlgmr.msra.gmra.mrb[0].mxu1 %vm686_vm3, %v3291_v29  ;;  %3005 = vmatmul.mubr.msk.bf16.vlgmr.msra.gmra.mrb[8].mxu0 %vm686_vm3, %v3292_v35 }
 0x12b   : > { %3009 = vmatpush3.bf16.msra.mxu1 %v3639_v30  ;;  %3021 = vmatpush3.bf16.msra.mxu0 %v3639_v30 }
 0x12c   : > { %3010 = vmatprep.subr.bf16.mxu1 %v3446_v8  ;;  %3022 = vmatprep.subr.bf16.mxu0 %v3446_v8 }
 0x12d   : > { %3016 = vmatprep.mubr.msk.bf16.mxu1 %vm3447_vm2, %v3446_v8  ;;  %3028 = vmatprep.mubr.msk.bf16.mxu0 %vm3447_vm2, %v3446_v8 }
 0x12f   : > { %3011 = vmatpush3.bf16.msra.mxu1 %v3637_v28  ;;  %3023 = vmatpush3.bf16.msra.mxu0 %v3637_v28 }
 0x130   : > { %3012 = vmatprep.subr.bf16.mxu1 %v3446_v8  ;;  %3024 = vmatprep.subr.bf16.mxu0 %v3446_v8 }
 0x133   : > { %3013 = vmatpush3.bf16.msra.mxu1 %v3655_v32  ;;  %3025 = vmatpush3.bf16.msra.mxu0 %v3655_v32 }
 0x134   : > { %3014 = vmatprep.subr.bf16.mxu1 %v3446_v8  ;;  %3026 = vmatprep.subr.bf16.mxu0 %v3446_v8 }
 0x137   : > { %3015 = vmatpush3.bf16.msra.mxu1 %v3651_v27  ;;  %3027 = vmatpush3.bf16.msra.mxu0 %v3651_v27 }
 0x138   : > { %3032 = vmatprep.subr.bf16.mxu1 %v3446_v8  ;;  %3044 = vmatprep.subr.bf16.mxu0 %v3446_v8 }
 0x13a   : > { %3017 = vmatmul.mubr.msk.bf16.vlgmr.msra.gmra.mrb[4].mxu1 %vm686_vm3, %v3293_v41  ;;  %3029 = vmatmul.mubr.msk.bf16.vlgmr.msra.gmra.mrb[12].mxu0 %vm686_vm3, %v3294_v42 }
 0x13b   : > { %3033 = vmatpush3.bf16.msra.mxu1 %v3639_v30  ;;  %3045 = vmatpush3.bf16.msra.mxu0 %v3639_v30 }
 0x13c   : > { %3034 = vmatprep.subr.bf16.mxu1 %v3446_v8  ;;  %3046 = vmatprep.subr.bf16.mxu0 %v3446_v8 }
 0x13d   : > { %3040 = vmatprep.mubr.msk.bf16.mxu1 %vm3447_vm2, %v3446_v8  ;;  %3052 = vmatprep.mubr.msk.bf16.mxu0 %vm3447_vm2, %v3446_v8 }
 0x13f   : > { %3035 = vmatpush3.bf16.msra.mxu1 %v3637_v28  ;;  %3047 = vmatpush3.bf16.msra.mxu0 %v3637_v28 }
 0x140   : > { %3036 = vmatprep.subr.bf16.mxu1 %v3446_v8  ;;  %3048 = vmatprep.subr.bf16.mxu0 %v3446_v8 }
 0x143   : > { %3037 = vmatpush3.bf16.msra.mxu1 %v3655_v32  ;;  %3049 = vmatpush3.bf16.msra.mxu0 %v3655_v32 }
 0x144   : > { %3038 = vmatprep.subr.bf16.mxu1 %v3446_v8  ;;  %3050 = vmatprep.subr.bf16.mxu0 %v3446_v8 }
 0x147   : > { %3039 = vmatpush3.bf16.msra.mxu1 %v3651_v27  ;;  %3051 = vmatpush3.bf16.msra.mxu0 %v3651_v27 }
 0x148   : > { %3056 = vmatprep.subr.bf16.mxu1 %v3446_v8  ;;  %3068 = vmatprep.subr.bf16.mxu0 %v3446_v8 }
 0x14a   : > { %3041 = vmatmul.mubr.msk.bf16.vlgmr.msra.gmra.mrb[8].mxu1 %vm686_vm3, %v3295_v43  ;;  %3053 = vmatmul.mubr.msk.bf16.vlgmr.msra.gmra.mrb[16].mxu0 %vm686_vm3, %v3296_v44 }
 0x14b   : > { %3057 = vmatpush3.bf16.msra.mxu1 %v3639_v30  ;;  %3069 = vmatpush3.bf16.msra.mxu0 %v3639_v30 }
 0x14c   : > { %3058 = vmatprep.subr.bf16.mxu1 %v3446_v8  ;;  %3070 = vmatprep.subr.bf16.mxu0 %v3446_v8 }
 0x14d   : > { %3064 = vmatprep.mubr.msk.bf16.mxu1 %vm3447_vm2, %v3446_v8  ;;  %3076 = vmatprep.mubr.msk.bf16.mxu0 %vm3447_vm2, %v3446_v8 }
 0x14f   : > { %3059 = vmatpush3.bf16.msra.mxu1 %v3637_v28  ;;  %3071 = vmatpush3.bf16.msra.mxu0 %v3637_v28 }
 0x150   : > { %3060 = vmatprep.subr.bf16.mxu1 %v3446_v8  ;;  %3072 = vmatprep.subr.bf16.mxu0 %v3446_v8 }
 0x153   : > { %3061 = vmatpush3.bf16.msra.mxu1 %v3655_v32  ;;  %3073 = vmatpush3.bf16.msra.mxu0 %v3655_v32 }
 0x154   : > { %3062 = vmatprep.subr.bf16.mxu1 %v3446_v8  ;;  %3074 = vmatprep.subr.bf16.mxu0 %v3446_v8 }
 0x157   : > { %3063 = vmatpush3.bf16.msra.mxu1 %v3651_v27  ;;  %3075 = vmatpush3.bf16.msra.mxu0 %v3651_v27 }
 0x158   : > { %3080 = vmatprep.subr.bf16.mxu1 %v3446_v8  ;;  %3092 = vmatprep.subr.bf16.mxu0 %v3446_v8 }
 0x15a   : > { %3065 = vmatmul.mubr.msk.bf16.vlgmr.msra.gmra.mrb[12].mxu1 %vm686_vm3, %v3297_v45  ;;  %3077 = vmatmul.mubr.msk.bf16.vlgmr.msra.gmra.mrb[20].mxu0 %vm686_vm3, %v3298_v46 }
 0x15b   : > { %3081 = vmatpush3.bf16.msra.mxu1 %v3639_v30  ;;  %3088 = vmatprep.mubr.msk.bf16.mxu1 %vm3447_vm2, %v3446_v8 }
 0x15c   : > { %3082 = vmatprep.subr.bf16.mxu1 %v3446_v8  ;;  %3102 = vmatprep.mubr.msk.bf16.mxu0 %vm3447_vm2, %v3446_v8 }
 0x15d   : > { %3093 = vmatpush3.bf16.msra.mxu0 %v3300_v4 }
 0x15e   : > { %3094 = vmatprep.subr.bf16.mxu0 %v3446_v8 }
 0x15f   : > { %3083 = vmatpush3.bf16.msra.mxu1 %v3637_v28 }
 0x160   : > { %3084 = vmatprep.subr.bf16.mxu1 %v3446_v8 }
 0x161   : > { %3095 = vmatpush3.bf16.msra.mxu0 %v3301_v20  ;;  %v2784_v20 = vld [vmem:[%s4136_s10 + $0x8] sm:$0x3] }
 0x162   : > { %3096 = vmatprep.subr.bf16.mxu0 %v3446_v8 }
 0x163   : > { %3085 = vmatpush3.bf16.msra.mxu1 %v3655_v32 }
 0x164   : > { %3086 = vmatprep.subr.bf16.mxu1 %v3446_v8 }
 0x165   : > { %3097 = vmatpush3.bf16.msra.mxu0 %v3302_v21  ;;  %v2778_v21 = vld [vmem:[%s4136_s10 + $0x2] sm:$0x3] }
 0x166   : > { %3098 = vmatprep.subr.bf16.mxu0 %v3446_v8 }
 0x167   : > { %3087 = vmatpush3.bf16.msra.mxu1 %v3651_v27 }
 0x168   : > { %3106 = vmatprep.subr.bf16.mxu1 %v3446_v8 }
 0x169   : > { %3099 = vmatpush3.bf16.msra.mxu0 %v3303_v22  ;;  %v2788_v22 = vld [vmem:[%s4136_s10 + $0xc] sm:$0x3] }
 0x16a   : > { %3089 = vmatmul.mubr.msk.bf16.vlgmr.msra.gmra.mrb[16].mxu1 %vm686_vm3, %v3299_v47  ;;  %3100 = vmatprep.subr.bf16.mxu0 %v3446_v8 }
 0x16b   : > { %3108 = vmatprep.mubr.msk.bf16.mxu1 %vm3447_vm2, %v3446_v8 }
 0x16d   : > { %3101 = vmatpush3.bf16.msra.mxu0 %v1252_v33 }
 0x16e   : > { %3130 = vmatprep.subr.bf16.mxu0 %v3446_v8 }
 0x1fd   : > { %v3775_v48 = vpop.f32.mrb[0].mxu1  ;;  %v777_v49 = vpop.f32.mrb[8].mxu0 }
 0x1fe   : > { %v2994_v50 = vpop.f32.mrb[1].mxu1  ;;  %v3006_v51 = vpop.f32.mrb[9].mxu0 }
 0x1ff   : > { %v3777_v52 = vpop.f32.mrb[2].mxu1  ;;  %v780_v53 = vpop.f32.mrb[10].mxu0 }
 0x200   : > { %v731_v54 = vpack.c.bf16 %v3777_v52, %v3775_v48  ;;  %v784_v55 = vpack.c.bf16 %v780_v53, %v777_v49  ;;  %v2995_v56 = vpop.f32.mrb[3].mxu1  ;;  %v3007_v57 = vpop.f32.mrb[11].mxu0  ;;  %v2770_v52 = vld [vmem:[%s4132_s6] ss:$0 sm:$0xff] }
 0x202   : > { %1157 = vrot.lane.b32.xlu0 %v784_v55, %s3448_s15 }
 0x20d   : > { %v830_v58 = vpop.f32.mrb[4].mxu1  ;;  %v883_v59 = vpop.f32.mrb[12].mxu0 }
 0x20e   : > { %v3018_v60 = vpop.f32.mrb[5].mxu1  ;;  %v3030_v61 = vpop.f32.mrb[13].mxu0 }
 0x20f   : > { %v833_v62 = vpop.f32.mrb[6].mxu1  ;;  %v886_v63 = vpop.f32.mrb[14].mxu0 }
 0x210   : > { %v837_v0 = vpack.c.bf16 %v833_v62, %v830_v58  ;;  %v3019_v1 = vpop.f32.mrb[7].mxu1  ;;  %v890_v2 = vpack.c.bf16 %v886_v63, %v883_v59  ;;  %v3031_v3 = vpop.f32.mrb[15].mxu0 }
 0x212   : > { %1160 = vrot.lane.b32.xlu0 %v837_v0, %s3449_s28  ;;  %1163 = vrot.lane.b32.xlu1 %v890_v2, %s3450_s18  ;;  %s4156_s18 = smov 96  }
 0x21d   : > { %v936_v5 = vpop.f32.mrb[8].mxu1  ;;  %v989_v6 = vpop.f32.mrb[16].mxu0 }
 0x21e   : > { %v3042_v7 = vpop.f32.mrb[9].mxu1  ;;  %v3054_v9 = vpop.f32.mrb[17].mxu0 }
 0x21f   : > { %v939_v10 = vpop.f32.mrb[10].mxu1  ;;  %v992_v12 = vpop.f32.mrb[18].mxu0 }
 0x220   : > { %v943_v14 = vpack.c.bf16 %v939_v10, %v936_v5  ;;  %v3043_v15 = vpop.f32.mrb[11].mxu1  ;;  %v996_v17 = vpack.c.bf16 %v992_v12, %v989_v6  ;;  %v3055_v18 = vpop.f32.mrb[19].mxu0 }
 0x221   : > { %v1314_v18 = vld [vmem:[%s4136_s10] sm:$0x3] }
 0x222   : > { %1166 = vrot.lane.b32.xlu1 %v943_v14, %s4142_s25  ;;  %1169 = vrot.lane.b32.xlu0 %v996_v17, %s3452_s26  ;;  %s3454_s25 = smov 56   ;;  %s4154_s26 = smov 32  }
 0x22d   : > { %v1042_v24 = vpop.f32.mrb[12].mxu1  ;;  %v1095_v25 = vpop.f32.mrb[20].mxu0 }
 0x22e   : > { %v3066_v26 = vpop.f32.mrb[13].mxu1  ;;  %v3078_v28 = vpop.f32.mrb[21].mxu0 }
 0x22f   : > { %v1045_v30 = vpop.f32.mrb[14].mxu1  ;;  %v1098_v31 = vpop.f32.mrb[22].mxu0  ;;  %v2786_v26 = vld [vmem:[%s4136_s10 + $0xa] sm:$0x3]  ;;  %v2790_v28 = vld [vmem:[%s4136_s10 + $0xe] sm:$0x3] }
 0x230   : > { %v1049_v11 = vpack.c.bf16 %v1045_v30, %v1042_v24  ;;  %v3067_v16 = vpop.f32.mrb[15].mxu1  ;;  %v1102_v13 = vpack.c.bf16 %v1098_v31, %v1095_v25  ;;  %v3079_v19 = vpop.f32.mrb[23].mxu0  ;;  %v2792_v24 = vld [vmem:[%s4136_s10 + $0x10] sm:$0x3]  ;;  %v2782_v25 = vld [vmem:[%s4136_s10 + $0x6] sm:$0x3] }
 0x231   : > { %v3305_v30 = vld [vmem:[%s4129_s3] sm:$0xff]   ;;  %v3456_v31 = vmov 0   ;;  %v3307_v19 = vld [vmem:[%s4129_s3 + $0x10] sm:$0xff]  }
 0x232   : > { %1172 = vrot.lane.b32.xlu1 %v1049_v11, %s3453_s22  ;;  %1175 = vrot.lane.b32.xlu0 %v1102_v13, %s3454_s25  ;;  %v3306_v11 = vld [vmem:[%s4129_s3 + $0x8] sm:$0xff]   ;;  %s3459_s25 = smov 112  }
 0x23d   : > { %v1148_v34 = vpop.f32.mrb[16].mxu1 }
 0x23e   : > { %v3090_v36 = vpop.f32.mrb[17].mxu1 }
 0x23f   : > { %v1151_v37 = vpop.f32.mrb[18].mxu1 }
 0x240   : > { %v1155_v38 = vpack.c.bf16 %v1151_v37, %v1148_v34  ;;  %v3091_v39 = vpop.f32.mrb[19].mxu1 }
 0x242   : > { %1178 = vrot.lane.b32.xlu1 %v1155_v38, %s4146_s27 }
 0x274   : > { %v1158_v40 = vpop.permute.xlu0 %1157 }
 0x275   : > { %v1183_v29 = vsel %vm1180_vm5, %v731_v54, %v1158_v40 }
 0x284   : > { %v1161_v27 = vpop.permute.xlu0 %1160  ;;  %v1164_v32 = vpop.permute.xlu1 %1163 }
 0x285   : > { %v1186_v35 = vsel %vm1184_vm6, %v1183_v29, %v1161_v27  ;;  %v3308_v27 = vld [vmem:[%s4129_s3 + $0x18] sm:$0xff]  }
 0x286   : > { %v1189_v42 = vsel %vm1187_vm7, %v1186_v35, %v1164_v32  ;;  %v3309_v35 = vld [vmem:[%s4129_s3 + $0x20] sm:$0xff]  }
 0x294   : > { %v1167_v41 = vpop.permute.xlu1 %1166  ;;  %v1170_v44 = vpop.permute.xlu0 %1169 }
 0x295   : > { %v1192_v43 = vsel %vm1190_vm8, %v1189_v42, %v1167_v41 }
 0x296   : > { %v1195_v46 = vsel %vm1193_vm9, %v1192_v43, %v1170_v44 }
 0x2a4   : > { %v1173_v45 = vpop.permute.xlu1 %1172  ;;  %v1176_v49 = vpop.permute.xlu0 %1175 }
 0x2a5   : > { %v1198_v47 = vsel %vm1196_vm10, %v1195_v46, %v1173_v45 }
 0x2a6   : > { %v1201_v48 = vsel %vm1199_vm11, %v1198_v47, %v1176_v49  ;;  %v3310_v49 = vld [vmem:[%s4129_s3 + $0x28] sm:$0xff]  }
 0x2b4   : > { %v1179_v50 = vpop.permute.xlu1 %1178 }
 0x2b5   : > { %v1203_v51 = vsel %vm686_vm3, %v1201_v48, %v1179_v50  ;;  %v3311_v50 = vld [vmem:[%s4129_s3 + $0x30] sm:$0xff]  }
 0x2b6   : > { %3103 = vmatmul.mubr.msk.bf16.vlgmr.msra.gmra.mrb[24].mxu0 %vm1247_vm12, %v1203_v51 }
 0x2b7   : > { %3132 = vmatprep.mubr.msk.bf16.mxu0 %vm3447_vm2, %v3446_v8 }
 0x389   : > { %v1288_v53 = vpop.f32.mrb[24].mxu0 }
 0x38a   : > { %v1289_v54 = vadd.f32 %v2770_v52, %v1288_v53  ;;  %v3104_v55 = vpop.f32.mrb[25].mxu0 }
 0x38b   : > { %v1291_v56 = vpop.f32.mrb[26].mxu0 }
 0x38c   : > { %v1295_v57 = vmin.f32 %v1289_v54, 20.0  ;;  %v1292_v58 = vadd.f32 %v2770_v52, %v1291_v56  ;;  %v3105_v59 = vpop.f32.mrb[27].mxu0 }
 0x38e   : > { %v1297_v60 = vmul.f32 1.442695, %v1295_v57  ;;  %v1296_v61 = vmin.f32 %v1292_v58, 20.0  ;;  %v3312_v57 = vld [vmem:[%s4129_s3 + $0x38] sm:$0xff]  }
 0x390   : > { %3366 = vpow2.f32 %v1297_v60  ;;  %v1299_v62 = vmul.f32 1.442695, %v1296_v61 }
 0x392   : > { %3368 = vpow2.f32 %v1299_v62 }
 0x39a   : > { %v3367_v63 = vpop.eup %3366 }
 0x39b   : > { %v1301_v0 = vadd.f32 2.0, %v3367_v63 }
 0x39c   : > { %v3369_v1 = vpop.eup %3368 }
 0x39d   : > { %v1303_v2 = vmul.f32 %v3367_v63, %v1301_v0  ;;  %v1302_v3 = vadd.f32 2.0, %v3369_v1  ;;  %v3313_v0 = vld [vmem:[%s4129_s3 + $0x40] sm:$0xff]  }
 0x39f   : > { %v1307_v4 = vadd.f32 2.0, %v1303_v2  ;;  %v1304_v5 = vmul.f32 %v3369_v1, %v1302_v3  ;;  %v1305_v9 = vmul.f32 %v1303_v2, %v1289_v54 }
 0x3a1   : > { %3370 = vrcp.f32 %v1307_v4  ;;  %v1308_v6 = vadd.f32 2.0, %v1304_v5  ;;  %v1306_v10 = vmul.f32 %v1304_v5, %v1292_v58 }
 0x3a3   : > { %3372 = vrcp.f32 %v1308_v6 }
 0x3ab   : > { %v3371_v7 = vpop.eup %3370 }
 0x3ac   : > { %v1311_v14 = vmul.f32 %v3371_v7, %v1305_v9 }
 0x3ad   : > { %v3373_v12 = vpop.eup %3372 }
 0x3ae   : > { %v1312_v15 = vmul.f32 %v3373_v12, %v1306_v10 }
 0x3b0   : > { %v1313_v17 = vpack.c.bf16 %v1312_v15, %v1311_v14 }
 0x3b2   : > { %3107 = vmatpush3.bf16.msra.mxu1 %v1313_v17  ;;  %3131 = vmatpush3.bf16.msra.mxu0 %v1313_v17 }
 0x3b3   : > { %3112 = vmatprep.subr.bf16.mxu1 %v3446_v8  ;;  %3142 = vmatprep.subr.bf16.mxu0 %v3446_v8 }
 0x3b5   : > { %3109 = vmatmul.mubr.msk.bf16.vlgmr.msra.gmra.mrb[20].mxu1 %vm1184_vm6, %v1314_v18  ;;  %3133 = vmatmul.mubr.msk.bf16.vlgmr.msra.gmra.mrb[28].mxu0 %vm1184_vm6, %v2784_v20 }
 0x3b6   : > { %3113 = vmatpush3.bf16.msra.mxu1 %v1313_v17  ;;  %3143 = vmatpush3.bf16.msra.mxu0 %v1313_v17 }
 0x3b7   : > { %3114 = vmatprep.mubr.msk.bf16.mxu1 %vm3447_vm2, %v3446_v8  ;;  %3118 = vmatprep.subr.bf16.mxu1 %v3446_v8 }
 0x3b8   : > { %3144 = vmatprep.mubr.msk.bf16.mxu0 %vm3447_vm2, %v3446_v8  ;;  %3154 = vmatprep.subr.bf16.mxu0 %v3446_v8 }
 0x3bd   : > { %3115 = vmatmul.mubr.msk.bf16.vlgmr.msra.gmra.mrb[24].mxu1 %vm1184_vm6, %v2778_v21  ;;  %3145 = vmatmul.mubr.msk.bf16.vlgmr.msra.gmra.mrb[32].mxu0 %vm1184_vm6, %v2788_v22 }
 0x3be   : > { %3119 = vmatpush3.bf16.msra.mxu1 %v1313_v17  ;;  %3155 = vmatpush3.bf16.msra.mxu0 %v1313_v17 }
 0x3bf   : > { %3120 = vmatprep.mubr.msk.bf16.mxu1 %vm3447_vm2, %v3446_v8  ;;  %3124 = vmatprep.subr.bf16.mxu1 %v3446_v8 }
 0x3c0   : > { %3156 = vmatprep.mubr.msk.bf16.mxu0 %vm3447_vm2, %v3446_v8  ;;  %3160 = vmatprep.subr.bf16.mxu0 %v3446_v8 }
 0x3c5   : > { %3121 = vmatmul.mubr.msk.bf16.vlgmr.msra.gmra.mrb[28].mxu1 %vm1184_vm6, %v2780_v23  ;;  %3157 = vmatmul.mubr.msk.bf16.vlgmr.msra.gmra.mrb[36].mxu0 %vm1184_vm6, %v2792_v24 }
 0x3c6   : > { %3125 = vmatpush3.bf16.msra.mxu1 %v1313_v17  ;;  %3126 = vmatprep.mubr.msk.bf16.mxu1 %vm3447_vm2, %v3446_v8 }
 0x3c7   : > { %3136 = vmatprep.subr.bf16.mxu1 %v3446_v8  ;;  %3162 = vmatprep.mubr.msk.bf16.mxu0 %vm3447_vm2, %v3446_v8 }
 0x3cd   : > { %3127 = vmatmul.mubr.msk.bf16.vlgmr.msra.gmra.mrb[32].mxu1 %vm1184_vm6, %v2782_v25 }
 0x3ce   : > { %3137 = vmatpush3.bf16.msra.mxu1 %v1313_v17  ;;  %3138 = vmatprep.mubr.msk.bf16.mxu1 %vm3447_vm2, %v3446_v8 }
 0x3cf   : > { %3148 = vmatprep.subr.bf16.mxu1 %v3446_v8 }
 0x3d5   : > { %3139 = vmatmul.mubr.msk.bf16.vlgmr.msra.gmra.mrb[36].mxu1 %vm1184_vm6, %v2786_v26 }
 0x3d6   : > { %3149 = vmatpush3.bf16.msra.mxu1 %v1313_v17  ;;  %3150 = vmatprep.mubr.msk.bf16.mxu1 %vm3447_vm2, %v3446_v8 }
 0x3d7   : > { %1849 = vmatprep.subr.bf16.mxu1 %v3456_v31 }
 0x3dd   : > { %3151 = vmatmul.mubr.msk.bf16.vlgmr.msra.gmra.mrb[40].mxu1 %vm1184_vm6, %v2790_v28 }
 0x3de   : > { %1850 = vmatpush1.bf16.msra.mxu1 %v3305_v30 }
 0x3df   : > { %1851 = vmatprep.subr.bf16.mxu1 %v3456_v31 }
 0x3e2   : > { %1852 = vmatpush1.bf16.msra.mxu1 %v3306_v11 }
 0x3e3   : > { %1853 = vmatprep.subr.bf16.mxu1 %v3456_v31 }
 0x3e6   : > { %1854 = vmatpush1.bf16.msra.mxu1 %v3307_v19 }
 0x3e7   : > { %1855 = vmatprep.subr.bf16.mxu1 %v3456_v31 }
 0x3ea   : > { %1856 = vmatpush1.bf16.msra.mxu1 %v3308_v27 }
 0x3eb   : > { %1857 = vmatprep.subr.bf16.mxu1 %v3456_v31 }
 0x3ee   : > { %1858 = vmatpush1.bf16.msra.mxu1 %v3309_v35 }
 0x3ef   : > { %1859 = vmatprep.subr.bf16.mxu1 %v3456_v31 }
 0x3f2   : > { %1860 = vmatpush1.bf16.msra.mxu1 %v3310_v49  ;;  %v2812_v49 = vld [vmem:[%s4137_s11 + $0x4] sm:$0x1] }
 0x3f3   : > { %1861 = vmatprep.subr.bf16.mxu1 %v3456_v31 }
 0x3f6   : > { %1862 = vmatpush1.bf16.msra.mxu1 %v3311_v50  ;;  %v2816_v50 = vld [vmem:[%s4137_s11 + $0x6] sm:$0x1] }
 0x3f7   : > { %1863 = vmatprep.subr.bf16.mxu1 %v3456_v31 }
 0x3fa   : > { %1864 = vmatpush1.bf16.msra.mxu1 %v3312_v57  ;;  %v3315_v57 = vld [vmem:[%s4130_s4] sm:$0xff]  }
 0x3fb   : > { %1865 = vmatprep.subr.bf16.mxu1 %v3456_v31 }
 0x3fe   : > { %1866 = vmatpush1.bf16.msra.mxu1 %v3313_v0 }
 0x3ff   : > { %3184 = vmatprep.subr.bf16.mxu1 %v3446_v8 }
 0x488   : > { %v3883_v16 = vpop.f32.mrb[20].mxu1  ;;  %v1536_v13 = vpop.f32.mrb[28].mxu0 }
 0x489   : > { %v3110_v33 = vpop.f32.mrb[21].mxu1  ;;  %v1542_v34 = vpack.c.bf16 %v1536_v13, %v1536_v13  ;;  %v3134_v36 = vpop.f32.mrb[29].mxu0  ;;  %v1358_v21 = vpack.c.bf16 %v3883_v16, %v3883_v16 }
 0x48a   : > { %v1355_v37 = vpop.f32.mrb[22].mxu1  ;;  %v1539_v38 = vpop.f32.mrb[30].mxu0  ;;  %v2794_v33 = vld [vmem:[%s4133_s7] ss:$0 sm:$0xff] }
 0x48b   : > { %v3111_v39 = vpop.f32.mrb[23].mxu1  ;;  %1737 = vrot.lane.b32.xlu1 %v1542_v34, %s4146_s27  ;;  %v3135_v40 = vpop.f32.mrb[31].mxu0  ;;  %s4155_s27 = smov 64  }
 0x490   : > { %v1398_v32 = vpop.f32.mrb[24].mxu1  ;;  %v1628_v29 = vpop.f32.mrb[32].mxu0 }
 0x491   : > { %v1404_v41 = vpack.c.bf16 %v1398_v32, %v1398_v32  ;;  %v3116_v42 = vpop.f32.mrb[25].mxu1  ;;  %v3146_v43 = vpop.f32.mrb[33].mxu0  ;;  %v1634_v55 = vpack.c.bf16 %v1628_v29, %v1628_v29 }
 0x492   : > { %v1401_v44 = vpop.f32.mrb[26].mxu1  ;;  %v1631_v45 = vpop.f32.mrb[34].mxu0 }
 0x493   : > { %1728 = vrot.lane.b32.xlu0 %v1404_v41, %s3449_s28  ;;  %v3117_v46 = vpop.f32.mrb[27].mxu1  ;;  %v3147_v47 = vpop.f32.mrb[35].mxu0  ;;  %s4144_s28 = smov 96  }
 0x494   : > { %v1899_v47 = vld [vmem:[%s4137_s11] sm:$0x1] }
 0x498   : > { %v1444_v48 = vpop.f32.mrb[28].mxu1  ;;  %v1720_v56 = vpop.f32.mrb[36].mxu0 }
 0x499   : > { %v1450_v51 = vpack.c.bf16 %v1444_v48, %v1444_v48  ;;  %v3122_v52 = vpop.f32.mrb[29].mxu1  ;;  %v1726_v59 = vpack.c.bf16 %v1720_v56, %v1720_v56  ;;  %v3158_v60 = vpop.f32.mrb[37].mxu0  ;;  %v2806_v48 = vld [vmem:[%s4137_s11 + $0x1] sm:$0x1] }
 0x49a   : > { %v1447_v53 = vpop.f32.mrb[30].mxu1  ;;  %v1723_v63 = vpop.f32.mrb[38].mxu0  ;;  %v2820_v52 = vld [vmem:[%s4137_s11 + $0x8] sm:$0x1]  ;;  %v3314_v56 = vld [vmem:[%s4130_s4 + $0x40] sm:$0xff]  }
 0x49b   : > { %1731 = vrot.lane.b32.xlu1 %v1450_v51, %s4154_s26  ;;  %v3123_v54 = vpop.f32.mrb[31].mxu1  ;;  %v3159_v2 = vpop.f32.mrb[39].mxu0  ;;  %2804 = vmatprep.mubr.msk.bf16.mxu1 %vm1184_vm6, %v1726_v59  ;;  %v2808_v51 = vld [vmem:[%s4137_s11 + $0x2] sm:$0x1]  ;;  %v2810_v53 = vld [vmem:[%s4137_s11 + $0x3] sm:$0x1] }
 0x49c   : > { %v2814_v54 = vld [vmem:[%s4137_s11 + $0x5] sm:$0x1]  ;;  %v3317_v63 = vld [vmem:[%s4130_s4 + $0x8] sm:$0xff]  }
 0x49f   : > { %1743 = vrot.lane.b32.xlu1 %v1634_v55, %s4144_s28  ;;  %v2818_v55 = vld [vmem:[%s4137_s11 + $0x7] sm:$0x1]  ;;  %s458_s28 = sand.u32 1, %s3436_s30  }
 0x4a0   : > { %v1490_v58 = vpop.f32.mrb[32].mxu1 }
 0x4a1   : > { %v1496_v61 = vpack.c.bf16 %v1490_v58, %v1490_v58  ;;  %v3128_v62 = vpop.f32.mrb[33].mxu1  ;;  %v3316_v58 = vld [vmem:[%s4130_s4 + $0x48] sm:$0xff]  }
 0x4a2   : > { %v1493_v1 = vpop.f32.mrb[34].mxu1 }
 0x4a3   : > { %1734 = vrot.lane.b32.xlu0 %v1496_v61, %s3453_s22  ;;  %v3129_v3 = vpop.f32.mrb[35].mxu1 }
 0x4a8   : > { %v1582_v4 = vpop.f32.mrb[36].mxu1 }
 0x4a9   : > { %v1588_v5 = vpack.c.bf16 %v1582_v4, %v1582_v4  ;;  %v3140_v6 = vpop.f32.mrb[37].mxu1  ;;  %v3318_v4 = vld [vmem:[%s4130_s4 + $0x50] sm:$0xff]  }
 0x4aa   : > { %v1585_v7 = vpop.f32.mrb[38].mxu1  ;;  %v3320_v6 = vld [vmem:[%s4130_s4 + $0x58] sm:$0xff]  }
 0x4ab   : > { %1740 = vrot.lane.b32.xlu0 %v1588_v5, %s3458_s21  ;;  %v3141_v9 = vpop.f32.mrb[39].mxu1  ;;  %v3319_v5 = vld [vmem:[%s4130_s4 + $0x10] sm:$0xff]   ;;  %s2844_s21 = sshll.u32 %s3557_s17, 4  ;;  %s2651_s17 = scalar_lea.sflag [#allocation3], %s458_s28 }
 0x4b0   : > { %v1674_v10 = vpop.f32.mrb[40].mxu1 }
 0x4b1   : > { %v1680_v12 = vpack.c.bf16 %v1674_v10, %v1674_v10  ;;  %v3152_v14 = vpop.f32.mrb[41].mxu1 }
 0x4b2   : > { %v1677_v15 = vpop.f32.mrb[42].mxu1 }
 0x4b3   : > { %1746 = vrot.lane.b32.xlu0 %v1680_v12, %s3459_s25  ;;  %v3153_v17 = vpop.f32.mrb[43].mxu1 }
 0x4b4   : > { %v3321_v17 = vld [vmem:[%s4130_s4 + $0x18] sm:$0xff]  }
 0x4fd   : > { %v1738_v18 = vpop.permute.xlu1 %1737 }
 0x505   : > { %v1729_v20 = vpop.permute.xlu0 %1728 }
 0x506   : > { %v1750_v24 = vsel %vm1184_vm6, %v1358_v21, %v1729_v20 }
 0x50d   : > { %v1732_v22 = vpop.permute.xlu1 %1731 }
 0x50e   : > { %v1752_v25 = vsel %vm1190_vm8, %v1750_v24, %v1732_v22  ;;  %v3323_v24 = vld [vmem:[%s4130_s4 + $0x20] sm:$0xff]  }
 0x511   : > { %v1744_v11 = vpop.permute.xlu1 %1743 }
 0x515   : > { %v1735_v23 = vpop.permute.xlu0 %1734 }
 0x516   : > { %v1754_v26 = vsel %vm1196_vm10, %v1752_v25, %v1735_v23  ;;  %v3322_v23 = vld [vmem:[%s4130_s4 + $0x60] sm:$0xff]   ;;  %v3324_v25 = vld [vmem:[%s4130_s4 + $0x68] sm:$0xff]  }
 0x517   : > { %v1756_v30 = vsel %vm686_vm3, %v1754_v26, %v1738_v18 }
 0x51d   : > { %v1741_v28 = vpop.permute.xlu0 %1740 }
 0x51e   : > { %v1759_v31 = vsel %vm1757_vm13, %v1756_v30, %v1741_v28 }
 0x51f   : > { %v1762_v13 = vsel %vm1760_vm14, %v1759_v31, %v1744_v11  ;;  %v3325_v31 = vld [vmem:[%s4130_s4 + $0x28] sm:$0xff]  }
 0x525   : > { %v1747_v19 = vpop.permute.xlu0 %1746 }
 0x526   : > { %v1765_v16 = vsel %vm1763_vm15, %v1762_v13, %v1747_v19  ;;  %v3326_v19 = vld [vmem:[%s4130_s4 + $0x70] sm:$0xff]  }
 0x527   : > { %1882 = vmatmul.mubr.bf16.vlgmr.msra.gmra.mrb[44].mxu1 %v1765_v16  ;;  %v3327_v16 = vld [vmem:[%s4130_s4 + $0x30] sm:$0xff]  }
 0x528   : > { %3186 = vmatprep.mubr.msk.bf16.mxu1 %vm3447_vm2, %v3446_v8 }
 0x5fa   : > { %v1883_v34 = vpop.f32.mrb[44].mxu1 }
 0x5fb   : > { %v1884_v36 = vadd.f32 %v2794_v33, %v1883_v34  ;;  %v1885_v37 = vpop.f32.mrb[45].mxu1  ;;  %v3328_v33 = vld [vmem:[%s4130_s4 + $0x78] sm:$0xff]  }
 0x5fc   : > { %v1886_v38 = vpop.f32.mrb[46].mxu1 }
 0x5fd   : > { %v1889_v39 = vmin.f32 %v1884_v36, 20.0  ;;  %v1887_v40 = vpop.f32.mrb[47].mxu1  ;;  %v3329_v38 = vld [vmem:[%s4130_s4 + $0x38] sm:$0xff]  }
 0x5fe   : > { %v3330_v40 = vld [vmem:[%s4130_s4 + $0x80] sm:$0xff]  }
 0x5ff   : > { %v1890_v27 = vmul.f32 1.442695, %v1889_v39 }
 0x601   : > { %3374 = vpow2.f32 %v1890_v27 }
 0x60b   : > { %v3375_v32 = vpop.eup %3374 }
 0x60c   : > { %v1892_v29 = vadd.f32 2.0, %v3375_v32 }
 0x60e   : > { %v1893_v35 = vmul.f32 %v3375_v32, %v1892_v29  ;;  %v3331_v32 = vld [vmem:[%s4130_s4 + $0x88] sm:$0xff]  }
 0x610   : > { %v1895_v41 = vadd.f32 2.0, %v1893_v35  ;;  %v1894_v42 = vmul.f32 %v1893_v35, %v1884_v36 }
 0x612   : > { %3376 = vrcp.f32 %v1895_v41 }
 0x61c   : > { %v3377_v43 = vpop.eup %3376 }
 0x61d   : > { %v1897_v44 = vmul.f32 %v3377_v43, %v1894_v42 }
 0x61f   : > { %v1898_v45 = vpack.c.bf16 %v1897_v44, %v1897_v44 }
 0x621   : > { %v1905_v46 = vsel %vm534_vm0, %v1898_v45, 0  ;;  %vm2648_vm0 = vcmask 253952  }
 0x622   : > { %3161 = vmatpush3.bf16.msra.mxu0 %v1905_v46  ;;  %3185 = vmatpush3.bf16.msra.mxu1 %v1905_v46 }
 0x623   : > { %3166 = vmatprep.subr.bf16.mxu0 %v3446_v8  ;;  %3196 = vmatprep.subr.bf16.mxu1 %v3446_v8 }
 0x625   : > { %3163 = vmatmul.mubr.msk.bf16.vlgmr.msra.gmra.mrb[40].mxu0 %vm1900_vm1, %v1899_v47  ;;  %3187 = vmatmul.mubr.msk.bf16.vlgmr.msra.gmra.mrb[48].mxu1 %vm1900_vm1, %v2812_v49 }
 0x626   : > { %3167 = vmatpush3.bf16.msra.mxu0 %v1905_v46  ;;  %3197 = vmatpush3.bf16.msra.mxu1 %v1905_v46 }
 0x627   : > { %3168 = vmatprep.mubr.msk.bf16.mxu0 %vm3447_vm2, %v3446_v8  ;;  %3172 = vmatprep.subr.bf16.mxu0 %v3446_v8 }
 0x628   : > { %3198 = vmatprep.mubr.msk.bf16.mxu1 %vm3447_vm2, %v3446_v8  ;;  %3208 = vmatprep.subr.bf16.mxu1 %v3446_v8 }
 0x62d   : > { %3169 = vmatmul.mubr.msk.bf16.vlgmr.msra.gmra.mrb[44].mxu0 %vm1900_vm1, %v2806_v48  ;;  %3199 = vmatmul.mubr.msk.bf16.vlgmr.msra.gmra.mrb[52].mxu1 %vm1900_vm1, %v2816_v50 }
 0x62e   : > { %3173 = vmatpush3.bf16.msra.mxu0 %v1905_v46  ;;  %3209 = vmatpush3.bf16.msra.mxu1 %v1905_v46 }
 0x62f   : > { %3174 = vmatprep.mubr.msk.bf16.mxu0 %vm3447_vm2, %v3446_v8  ;;  %3178 = vmatprep.subr.bf16.mxu0 %v3446_v8 }
 0x630   : > { %3210 = vmatprep.mubr.msk.bf16.mxu1 %vm3447_vm2, %v3446_v8  ;;  %3214 = vmatprep.subr.bf16.mxu1 %v3446_v8 }
 0x635   : > { %3175 = vmatmul.mubr.msk.bf16.vlgmr.msra.gmra.mrb[48].mxu0 %vm1900_vm1, %v2808_v51  ;;  %3211 = vmatmul.mubr.msk.bf16.vlgmr.msra.gmra.mrb[56].mxu1 %vm1900_vm1, %v2820_v52 }
 0x636   : > { %3179 = vmatpush3.bf16.msra.mxu0 %v1905_v46  ;;  %3180 = vmatprep.mubr.msk.bf16.mxu0 %vm3447_vm2, %v3446_v8 }
 0x637   : > { %3190 = vmatprep.subr.bf16.mxu0 %v3446_v8  ;;  %3218 = vmatprep.mubr.msk.bf16.mxu1 %vm3447_vm2, %v3446_v8 }
 0x638   : > { %3215 = vmatpush3.bf16.msra.mxu1 %v3330_v40 }
 0x639   : > { %3216 = vmatprep.subr.bf16.mxu1 %v3446_v8 }
 0x63c   : > { %3217 = vmatpush3.bf16.msra.mxu1 %v3331_v32 }
 0x63d   : > { %3181 = vmatmul.mubr.msk.bf16.vlgmr.msra.gmra.mrb[52].mxu0 %vm1900_vm1, %v2810_v53  ;;  %3222 = vmatprep.subr.bf16.mxu1 %v3446_v8 }
 0x63e   : > { %3191 = vmatpush3.bf16.msra.mxu0 %v1905_v46  ;;  %3192 = vmatprep.mubr.msk.bf16.mxu0 %vm3447_vm2, %v3446_v8 }
 0x63f   : > { %3202 = vmatprep.subr.bf16.mxu0 %v3446_v8 }
 0x645   : > { %3193 = vmatmul.mubr.msk.bf16.vlgmr.msra.gmra.mrb[56].mxu0 %vm1900_vm1, %v2814_v54 }
 0x646   : > { %3203 = vmatpush3.bf16.msra.mxu0 %v1905_v46  ;;  %3204 = vmatprep.mubr.msk.bf16.mxu0 %vm3447_vm2, %v3446_v8 }
 0x647   : > { %2942 = vmatprep.subr.bf16.mxu0 %v3314_v56 }
 0x64d   : > { %3205 = vmatmul.mubr.msk.bf16.vlgmr.msra.gmra.mrb[60].mxu0 %vm1900_vm1, %v2818_v55 }
 0x64e   : > { %2943 = vmatpush3.bf16.msra.mxu0 %v3315_v57 }
 0x64f   : > { %2944 = vmatprep.subr.bf16.mxu0 %v3316_v58 }
 0x652   : > { %2945 = vmatpush3.bf16.msra.mxu0 %v3317_v63 }
 0x653   : > { %2946 = vmatprep.subr.bf16.mxu0 %v3318_v4 }
 0x656   : > { %2947 = vmatpush3.bf16.msra.mxu0 %v3319_v5 }
 0x657   : > { %2948 = vmatprep.subr.bf16.mxu0 %v3320_v6 }
 0x65a   : > { %2949 = vmatpush3.bf16.msra.mxu0 %v3321_v17 }
 0x65b   : > { %2950 = vmatprep.subr.bf16.mxu0 %v3322_v23 }
 0x65e   : > { %2951 = vmatpush3.bf16.msra.mxu0 %v3323_v24 }
 0x65f   : > { %2952 = vmatprep.subr.bf16.mxu0 %v3324_v25 }
 0x662   : > { %2953 = vmatpush3.bf16.msra.mxu0 %v3325_v31 }
 0x663   : > { %2954 = vmatprep.subr.bf16.mxu0 %v3326_v19  ;;  %v2592_v19 = vld [vmem:[%s4139_s13] sm:$0x1] }
 0x666   : > { %2955 = vmatpush3.bf16.msra.mxu0 %v3327_v16 }
 0x667   : > { %2956 = vmatprep.subr.bf16.mxu0 %v3328_v33 }
 0x66a   : > { %2957 = vmatpush3.bf16.msra.mxu0 %v3329_v38 }
 0x6f8   : > { %v3995_v59 = vpop.f32.mrb[40].mxu0  ;;  %v3997_v60 = vpop.f32.mrb[48].mxu1 }
 0x6f9   : > { %v3164_v61 = vpop.f32.mrb[41].mxu0  ;;  %v3188_v62 = vpop.f32.mrb[49].mxu1  ;;  %v2131_v57 = vpack.c.bf16 %v3997_v60, %v3997_v60 }
 0x6fa   : > { %v1944_v0 = vpop.f32.mrb[42].mxu0  ;;  %v2128_v1 = vpop.f32.mrb[50].mxu1  ;;  %v1947_v62 = vpack.c.bf16 %v3995_v59, %v3995_v59  ;;  %v3332_v59 = vld [vmem:[%s4138_s12] sm:$0xff]  }
 0x6fb   : > { %v3165_v2 = vpop.f32.mrb[43].mxu0  ;;  %v3189_v3 = vpop.f32.mrb[51].mxu1 }
 0x700   : > { %v1987_v7 = vpop.f32.mrb[44].mxu0  ;;  %v2217_v9 = vpop.f32.mrb[52].mxu1 }
 0x701   : > { %v1993_v10 = vpack.c.bf16 %v1987_v7, %v1987_v7  ;;  %v3170_v12 = vpop.f32.mrb[45].mxu0  ;;  %v2223_v14 = vpack.c.bf16 %v2217_v9, %v2217_v9  ;;  %v3200_v15 = vpop.f32.mrb[53].mxu1 }
 0x702   : > { %v1990_v18 = vpop.f32.mrb[46].mxu0  ;;  %v2220_v20 = vpop.f32.mrb[54].mxu1  ;;  %v2386_v15 = vld [vmem:[%s4134_s8] sm:$0x1] }
 0x703   : > { %2317 = vrot.lane.b32.xlu0 %v1993_v10, %s4154_s26  ;;  %v3171_v21 = vpop.f32.mrb[47].mxu0  ;;  %2329 = vrot.lane.b32.xlu1 %v2223_v14, %s4155_s27  ;;  %v3201_v22 = vpop.f32.mrb[55].mxu1  ;;  %v3333_v10 = vld [vmem:[%s4138_s12 + $0x8] sm:$0xff]  }
 0x708   : > { %v2033_v26 = vpop.f32.mrb[48].mxu0  ;;  %v2309_v35 = vpop.f32.mrb[56].mxu1 }
 0x709   : > { %v2039_v28 = vpack.c.bf16 %v2033_v26, %v2033_v26  ;;  %v3176_v30 = vpop.f32.mrb[49].mxu0  ;;  %v2315_v43 = vpack.c.bf16 %v2309_v35, %v2309_v35  ;;  %v3212_v44 = vpop.f32.mrb[57].mxu1 }
 0x70a   : > { %v2036_v11 = vpop.f32.mrb[50].mxu0  ;;  %v2312_v46 = vpop.f32.mrb[58].mxu1 }
 0x70b   : > { %2320 = vrot.lane.b32.xlu0 %v2039_v28, %s4155_s27  ;;  %v3177_v13 = vpop.f32.mrb[51].mxu0  ;;  %3219 = vmatmul.mubr.msk.bf16.vlgmr.msra.gmra.mrb[60].mxu1 %vm1190_vm8, %v2315_v43  ;;  %v3213_v49 = vpop.f32.mrb[59].mxu1  ;;  %s4084_s27 = scalar_lea.hbm %s4140_s14, %s2844_s21 }
 0x70c   : > { %3226 = vmatprep.mubr.msk.bf16.mxu1 %vm3447_vm2, %v3446_v8  ;;  %3223 = vmatpush3.bf16.msra.mxu1 %v3332_v59 }
 0x70d   : > { %3224 = vmatprep.subr.bf16.mxu1 %v3446_v8 }
 0x710   : > { %v2079_v34 = vpop.f32.mrb[52].mxu0  ;;  %3225 = vmatpush3.bf16.msra.mxu1 %v3333_v10 }
 0x711   : > { %v2085_v36 = vpack.c.bf16 %v2079_v34, %v2079_v34  ;;  %v3182_v37 = vpop.f32.mrb[53].mxu0 }
 0x712   : > { %v2082_v39 = vpop.f32.mrb[54].mxu0 }
 0x713   : > { %2323 = vrot.lane.b32.xlu0 %v2085_v36, %s4156_s18  ;;  %v3183_v27 = vpop.f32.mrb[55].mxu0 }
 0x718   : > { %v2171_v29 = vpop.f32.mrb[56].mxu0 }
 0x719   : > { %v2177_v41 = vpack.c.bf16 %v2171_v29, %v2171_v29  ;;  %v3194_v42 = vpop.f32.mrb[57].mxu0 }
 0x71a   : > { %v2174_v45 = vpop.f32.mrb[58].mxu0 }
 0x71b   : > { %2326 = vrot.lane.b32.xlu1 %v2177_v41, %s4154_s26  ;;  %v3195_v47 = vpop.f32.mrb[59].mxu0  ;;  %s459_s26 = scalar_lea.vmem [#allocation2], %s458_s28 }
 0x71c   : > { %s2663_s25 = sshll.u32 %s459_s26, 4  ;;  %s4086_s25 = int_to_ptr.vmem [resolvable:$true] %s2663_s25 }
 0x71d   : > { %s3382_s15 = scalar_lea.vmem %s4086_s25, 16 }
 0x71e   : > { %p3383_p11 = scmp.ne.s32.totalorder %s4086_s25, %s3382_s15 }
 0x720   : > { %v2263_v48 = vpop.f32.mrb[60].mxu0  ;;  %p3384_p12 = pnand %p3383_p11, %p3574_p5 }
 0x721   : > { %v2269_v50 = vpack.c.bf16 %v2263_v48, %v2263_v48  ;;  %v3206_v51 = vpop.f32.mrb[61].mxu0 }
 0x722   : > { %v2266_v52 = vpop.f32.mrb[62].mxu0  ;;  %p3385_p13 = pneg %p3384_p12 }
 0x723   : > { %2332 = vrot.lane.b32.xlu1 %v2269_v50, %s4156_s18  ;;  %v3207_v53 = vpop.f32.mrb[63].mxu0  ;;  %s3460_s18 = smov [#allocation2]  }
 0x724   : > { %s3386_s20 = sshll.u32 %s3460_s18, 4  ;;  %s3387_s20 = int_to_ptr.vmem [resolvable:$false] %s3386_s20 }
 0x725   : > { %s3388_s22 = scalar_lea.vmem %s3387_s20, 32  ;;  %p3389_p0 = scmp.lt.s32.totalorder %s4086_s25, %s3387_s20 }
 0x726   : > { %p3390_p1 = scmp.lt.s32.totalorder %s3388_s22, %s3382_s15 }
 0x728   : > { %p3391_p2 = por %p3390_p1, %p3389_p0 }
 0x72a   : > { %p3392_p3 = pnand %p3391_p2, %p3385_p13 }
 0x775   : > { %v2330_v54 = vpop.permute.xlu1 %2329  ;;  %v2318_v55 = vpop.permute.xlu0 %2317 }
 0x776   : > { %v2336_v0 = vsel %vm1190_vm8, %v1947_v62, %v2318_v55 }
 0x77d   : > { %v2321_v58 = vpop.permute.xlu0 %2320 }
 0x77e   : > { %v2338_v3 = vsel %vm686_vm3, %v2336_v0, %v2321_v58 }
 0x785   : > { %v2324_v63 = vpop.permute.xlu0 %2323 }
 0x786   : > { %v2340_v5 = vsel %vm1760_vm14, %v2338_v3, %v2324_v63 }
 0x78d   : > { %v2327_v56 = vpop.permute.xlu1 %2326 }
 0x78e   : > { %v2344_v61 = vsel %vm1190_vm8, %v2131_v57, %v2327_v56 }
 0x78f   : > { %v2346_v2 = vsel %vm686_vm3, %v2344_v61, %v2330_v54 }
 0x795   : > { %v2333_v1 = vpop.permute.xlu1 %2332 }
 0x796   : > { %v2348_v4 = vsel %vm1760_vm14, %v2346_v2, %v2333_v1 }
 0x797   : > { %2530 = vmatprep.mubr.bf16.mxu0 %v2348_v4 }
 0x798   : > { %2531 = vmatmul.mubr.bf16.vlgmr.msra.gmra.mrb[64].mxu0 %v2340_v5 }
 0x7de   : > { %v2572_v60 = vpop.f32.mrb[60].mxu1 }
 0x7df   : > { %v3220_v6 = vpop.f32.mrb[61].mxu1 }
 0x7e0   : > { %v2575_v7 = vpop.f32.mrb[62].mxu1 }
 0x7e1   : > { %v3221_v9 = vpop.f32.mrb[63].mxu1 }
 0x86b   : > { %v2958_v12 = vpop.f32.mrb[64].mxu0 }
 0x86c   : > { %v2959_v14 = vpop.f32.mrb[65].mxu0 }
 0x86d   : > { %v2960_v17 = vadd.f32 %v2959_v14, %v2958_v12  ;;  %v2961_v18 = vpop.f32.mrb[66].mxu0 }
 0x86e   : > { %v2962_v20 = vpop.f32.mrb[67].mxu0 }
 0x86f   : > { %v2533_v21 = vadd.f32 %v2960_v17, %v2386_v15 }
 0x871   : > { %v2573_v22 = vadd.f32 %v2572_v60, %v2533_v21 }
 0x873   : > { %v2578_v23 = vmin.f32 %v2573_v22, 20.0 }
 0x875   : > { %v2579_v8 = vmul.f32 1.442695, %v2578_v23 }
 0x877   : > { %3378 = vpow2.f32 %v2579_v8 }
 0x881   : > { %v3379_v24 = vpop.eup %3378 }
 0x882   : > { %v2581_v25 = vadd.f32 2.0, %v3379_v24 }
 0x884   : > { %v2582_v26 = vmul.f32 %v3379_v24, %v2581_v25 }
 0x886   : > { %v2584_v28 = vadd.f32 2.0, %v2582_v26  ;;  %v2583_v30 = vmul.f32 %v2582_v26, %v2573_v22 }
 0x888   : > { %3380 = vrcp.f32 %v2584_v28 }
 0x892   : > { %v3381_v31 = vpop.eup %3380 }
 0x893   : > { %v2586_v11 = vmul.f32 %v3381_v31, %v2583_v30 }
 0x895   : > { %v2587_v13 = vpack.c.bf16 %v2586_v11, %v2586_v11 }
 0x897   : > { %3227 = vmatmul.mubr.msk.bf16.vlgmr.msra.gmra.mrb[64].mxu1 %vm1190_vm8, %v2587_v13 }
 0x96a   : > { %v2642_v16 = vpop.f32.mrb[64].mxu1 }
 0x96b   : > { %v2643_v33 = vadd.f32 %v2642_v16, %v2592_v19  ;;  %v3228_v34 = vpop.f32.mrb[65].mxu1 }
 0x96c   : > { %v2645_v36 = vpop.f32.mrb[66].mxu1 }
 0x96d   : > { %v3229_v37 = vpop.f32.mrb[67].mxu1  ;;  %2649 = vst.msk [vmem:[%s459_s26] sm:$0x1] %vm2648_vm0, %v2643_v33 }
 0x96e   : > { %3395 = shalt.err (!%p3392_p3)
}
 0x96f   : > { %s3396_s28 = scalar_lea.hbm %s4084_s27, 16  ;;  %s3400_s0 = scalar_lea.hbm %s4140_s14, 32 }
 0x970   : > { %p3397_p4 = scmp.ne.s32.totalorder %s4084_s27, %s3396_s28  ;;  %p3401_p9 = scmp.lt.u32.totalorder %s4084_s27, %s4140_s14 }
 0x971   : > { %p3402_p10 = scmp.lt.u32.totalorder %s3400_s0, %s3396_s28  ;;  %p3404_p12 = scmp.lt.u32.totalorder %s3396_s28, %s4084_s27 }
 0x972   : > { %p3398_p7 = pnand %p3397_p4, %p3574_p5 }
 0x973   : > { %p3403_p11 = por %p3402_p10, %p3401_p9 }
 0x974   : > { %p3399_p8 = pneg %p3398_p7 }
 0x975   : > { %p3405_p13 = por %p3404_p12, %p3403_p11 }
 0x977   : > { %p3406_p0 = pnand %p3405_p13, %p3399_p8 }
 0x979   : > { %3409 = shalt.err (!%p3406_p0)
}
 0x97a   : > { %3231 = dma.vmem_to_hbm [thread:$0]  (%p3574_p5), %s4086_s25, 16, %s4084_s27, %s2651_s17  }
 0x97b PF: > { %p3237_p1 = scmp.ge.s32.totalorder %s3444_s16, 2  ;;  %s2675_s15 = sand.u32 1, %s3432_s29  }
 0x97c   : > { %s2676_s22 = scalar_lea.sflag [#allocation3], %s2675_s15 }
 0x97d   : > { %p3234_p2 = pnand %p3237_p1, %p3578_p6 }
 0x97f   : > { %3427 = dma.done.wait (!%p3234_p2), %s2676_s22, 16  }
 0x980   : > { %3429 = vsyncadd (!%p3234_p2), %s2676_s22, 4294967280  ;;  %s4157_s28 = sld [smem:[#allocation5_spill]]  ;;  %s4158_s15 = sld [smem:[#allocation6_spill]] }
 0x981   : > { %p24_p3 = scmp.ge.s32.totalorder %s3561_s19, 4   ;;  %s4159_s29 = smov %s3436_s30 }
 0x982   : > { %s4161_s16 = smov %s3561_s19 }
 0x983   :  { %26 = sbr.rel (!%p24_p3) target bundleno = 5 (0x5), region = 135 }
 0x986   : > { %s4160_s30 = smov %s4157_s28 }
 0x98a   :  { %2680 = vsyncpa [#allocation3], 1 }
 0x98b   :  { %2682 = vsyncpa [#allocation3 + $0x1], 1 }

</bundles_post_ra>
